<compile_context>
chip_gen: v7x
topology: tpu7x:2x2x1
jax: 0.10.0
libtpu: 0.0.40
codegen_flags: <defaults>
</compile_context>

<pallas_src>
import math
import numpy as np
import jax
import jax.numpy as jnp
from jax import lax
from jax.experimental import pallas as pl
from jax.experimental.pallas import tpu as pltpu  # noqa: F401  (TPU backend namespace)

# ----- model hyper-parameters (small, consistent with the module's __init__) -----
B, S, E = 2, 8, 16          # batch, seq length, input_dim (= d_model)
NUM_HEADS = 2               # passed explicitly (E % NUM_HEADS == 0), head_dim = 8
HEAD_DIM = E // NUM_HEADS
HIDDEN = 32                 # hidden_dim (FFN width and doc_fc width)
DOC_DIM = 8                 # doc_dim
OUT_DIM = 4                 # output_dim
NUM_LAYERS = 2
EPS = 1e-5                  # nn.LayerNorm default
BS = B * S                  # 16 tokens total

# ----- packed parameter-slab layout (all static Python constants) -----
# mats_a: (NUM_LAYERS, E, 96) -> per layer: [in_w^T (E,3E) | op_w^T (E,E) | f1_w^T (E,HIDDEN)]
MA_W = 3 * E + E + HIDDEN                       # 96
# mats_b: (120, 32) -> rows [l*HIDDEN:(l+1)*HIDDEN] = f2_w^T[l] (HIDDEN,E) padded,
#                      rows [64:72] = doc_w^T (DOC_DIM,HIDDEN),
#                      rows [72:120] = fc_w^T (E+HIDDEN,OUT_DIM) padded.
MB_W = HIDDEN                                   # 32
MB_DOC_ROW = NUM_LAYERS * HIDDEN                # 64
MB_FC_ROW = MB_DOC_ROW + DOC_DIM                # 72
# vecs: (52, 48) -> per layer 8 rows [in_b, op_b, n1_w, n1_b, n2_w, n2_b, f1_b, f2_b],
#                   then doc_b, fc_b, then PE tiled to BS rows,
#                   then block-diagonal additive attention mask (BS rows),
#                   then the mean-pooling matrix (B rows).
VEC_W = 3 * E                                   # 48
VROWS_PER_LAYER = 8
DOC_B_ROW = NUM_LAYERS * VROWS_PER_LAYER        # 16
FC_B_ROW = DOC_B_ROW + 1                        # 17
PE_ROW = FC_B_ROW + 1                           # 18
MASK_ROW = PE_ROW + BS                          # 34
POOL_ROW = MASK_ROW + BS                        # 50
VEC_ROWS = POOL_ROW + B                         # 52


def _layer_norm(x, w, b):
    mu = jnp.mean(x, axis=-1, keepdims=True)
    var = jnp.mean((x - mu) ** 2, axis=-1, keepdims=True)
    return (x - mu) * lax.rsqrt(var + EPS) * w + b


def transformer_kernel(tok_ref, doc_ref, ma_ref, mb_ref, vec_ref, out_ref):
    V = vec_ref[...]                                   # (52, 48)  biases / norms / PE / mask
    MB = mb_ref[...]                                   # (120, 32) f2 / doc / fc weights

    # positional encoding (pre-tiled to BS rows on the host)
    x = tok_ref[...] + V[PE_ROW:PE_ROW + BS, 0:E]      # (BS, E)
    attn_bias = V[MASK_ROW:MASK_ROW + BS, 0:BS]        # (BS, BS) 0 / -1e30 block-diagonal
    pool = V[POOL_ROW:POOL_ROW + B, 0:BS]              # (B, BS)  mean-pooling matrix

    for l in range(NUM_LAYERS):                        # unrolled (trip count 2)
        Wa = ma_ref[l]                                 # (E, 96)
        r = l * VROWS_PER_LAYER
        in_b = V[r + 0:r + 1, 0:3 * E]
        op_b = V[r + 1:r + 2, 0:E]
        n1_w = V[r + 2:r + 3, 0:E]
        n1_b = V[r + 3:r + 4, 0:E]
        n2_w = V[r + 4:r + 5, 0:E]
        n2_b = V[r + 5:r + 6, 0:E]
        f1_b = V[r + 6:r + 7, 0:HIDDEN]
        f2_b = V[r + 7:r + 8, 0:E]

        # ---- multi-head self-attention (eval mode: no dropout) ----
        # q scaling is pre-folded into the packed in-proj weights / bias.
        qkv = jnp.dot(x, Wa[:, 0:3 * E],
                      preferred_element_type=jnp.float32) + in_b            # (BS, 3E)
        op_wT = Wa[:, 3 * E:4 * E]                                           # (E, E)

        acc = jnp.zeros((BS, E), jnp.float32)
        for h in range(NUM_HEADS):
            lo, hi = h * HEAD_DIM, (h + 1) * HEAD_DIM
            qh = qkv[:, lo:hi]                                               # (BS, HD)
            kh = qkv[:, E + lo:E + hi]                                       # (BS, HD)
            vh = qkv[:, 2 * E + lo:2 * E + hi]                               # (BS, HD)
            sc = lax.dot_general(qh, kh, (((1,), (1,)), ((), ())),
                                 preferred_element_type=jnp.float32)        # (BS, BS)
            sc = sc + attn_bias                                              # mask cross-batch
            sc = sc - jnp.max(sc, axis=-1, keepdims=True)
            p = jnp.exp(sc)
            p = p * pl.reciprocal(jnp.sum(p, axis=-1, keepdims=True), approx=True)
            ctx = jnp.dot(p, vh, preferred_element_type=jnp.float32)         # (BS, HD)
            # fold the head-concat into the out-projection accumulation
            acc = acc + jnp.dot(ctx, op_wT[lo:hi, :],
                                preferred_element_type=jnp.float32)          # (BS, E)
        attn = acc + op_b                                                    # (BS, E)
        x = _layer_norm(x + attn, n1_w, n1_b)

        # ---- feed-forward (Linear -> ReLU -> Linear), post-norm residual ----
        f1_wT = Wa[:, 4 * E:4 * E + HIDDEN]                                  # (E, HIDDEN)
        f2_wT = MB[l * HIDDEN:(l + 1) * HIDDEN, 0:E]                         # (HIDDEN, E)
        h1 = jnp.maximum(jnp.dot(x, f1_wT, preferred_element_type=jnp.float32) + f1_b, 0.0)
        h2 = jnp.dot(h1, f2_wT, preferred_element_type=jnp.float32) + f2_b
        x = _layer_norm(x + h2, n2_w, n2_b)

    # ---- mean pooling over the sequence, per batch element (one MXU matmul) ----
    seq_emb = jnp.dot(pool, x, preferred_element_type=jnp.float32)           # (B, E)

    # ---- doc branch ----
    doc_wT = MB[MB_DOC_ROW:MB_DOC_ROW + DOC_DIM, :]                          # (DOC_DIM, HIDDEN)
    doc_b = V[DOC_B_ROW:DOC_B_ROW + 1, 0:HIDDEN]
    doc_emb = jnp.maximum(
        jnp.dot(doc_ref[...], doc_wT, preferred_element_type=jnp.float32) + doc_b,
        0.0)                                                                 # (B, HIDDEN)

    # ---- final linear: fc([seq_emb, doc_emb]) as two matmuls (no lane concat) ----
    fc_wT = MB[MB_FC_ROW:MB_FC_ROW + E + HIDDEN, 0:OUT_DIM]                  # (E+HIDDEN, OUT)
    fc_b = V[FC_B_ROW:FC_B_ROW + 1, 0:OUT_DIM]
    out_ref[...] = (jnp.dot(seq_emb, fc_wT[0:E, :], preferred_element_type=jnp.float32)
                    + jnp.dot(doc_emb, fc_wT[E:E + HIDDEN, :],
                              preferred_element_type=jnp.float32)
                    + fc_b)                                                  # (B, OUT_DIM)


# --------------------- host-side packing of parameters ---------------------
def pack_params(params, pe):
    # fold the 1/sqrt(head_dim) attention scale into the q part of the in-projection
    scale = 1.0 / math.sqrt(HEAD_DIM)
    qkv_scale = jnp.concatenate(
        [jnp.full((E,), scale, jnp.float32), jnp.ones((2 * E,), jnp.float32)])
    in_w = params["in_w"] * qkv_scale[None, :, None]        # (L, 3E, E)
    in_b = params["in_b"] * qkv_scale[None, :]              # (L, 3E)

    in_wT = jnp.transpose(in_w, (0, 2, 1))                  # (L, E, 3E)
    op_wT = jnp.transpose(params["op_w"], (0, 2, 1))        # (L, E, E)
    f1_wT = jnp.transpose(params["f1_w"], (0, 2, 1))        # (L, E, HIDDEN)
    f2_wT = jnp.transpose(params["f2_w"], (0, 2, 1))        # (L, HIDDEN, E)
    doc_wT = params["doc_w"].T                              # (DOC_DIM, HIDDEN)
    fc_wT = params["fc_w"].T                                # (E+HIDDEN, OUT_DIM)

    mats_a = jnp.concatenate([in_wT, op_wT, f1_wT], axis=-1)        # (L, E, 96)

    def pad_cols(a, width):
        return jnp.pad(a, ((0, 0), (0, width - a.shape[-1])))

    mats_b = jnp.concatenate(
        [pad_cols(f2_wT.reshape(NUM_LAYERS * HIDDEN, E), MB_W),
         pad_cols(doc_wT, MB_W),
         pad_cols(fc_wT, MB_W)], axis=0)                            # (120, 32)

    rows = []
    for l in range(NUM_LAYERS):
        rows += [in_b[l], params["op_b"][l],
                 params["n1_w"][l], params["n1_b"][l],
                 params["n2_w"][l], params["n2_b"][l],
                 params["f1_b"][l], params["f2_b"][l]]
    rows += [params["doc_b"][0], params["fc_b"][0]]
    vec_rows = [jnp.pad(v, (0, VEC_W - v.shape[0]))[None, :] for v in rows]

    pe_tiled = jnp.tile(pe, (B, 1))                                 # (BS, E)
    vec_rows.append(jnp.pad(pe_tiled, ((0, 0), (0, VEC_W - E))))

    # block-diagonal additive attention mask (0 within a batch element, -1e30 across)
    blk = np.kron(np.eye(B, dtype=np.float32), np.ones((S, S), np.float32))  # (BS, BS)
    attn_bias = np.where(blk > 0.0, 0.0, -1e30).astype(np.float32)
    vec_rows.append(jnp.pad(jnp.asarray(attn_bias), ((0, 0), (0, VEC_W - BS))))

    # mean-pooling matrix: 1/S on own batch block, 0 elsewhere
    pool = np.kron(np.eye(B, dtype=np.float32),
                   np.full((1, S), 1.0 / S, np.float32))            # (B, BS)
    vec_rows.append(jnp.pad(jnp.asarray(pool), ((0, 0), (0, VEC_W - BS))))

    vecs = jnp.concatenate(vec_rows, axis=0)                        # (52, 48)
    assert vecs.shape == (VEC_ROWS, VEC_W)
    return (mats_a.astype(jnp.float32), mats_b.astype(jnp.float32),
            vecs.astype(jnp.float32))


def transformer_forward(seq, doc, pe, params):
    mats_a, mats_b, vecs = pack_params(params, pe)
    tokens = seq.reshape(BS, E)                                     # layout-only reshape
    return pl.pallas_call(
        transformer_kernel,
        out_shape=jax.ShapeDtypeStruct((B, OUT_DIM), jnp.float32),
    )(tokens, doc, mats_a, mats_b, vecs)


# ----------------- deterministic parameter / buffer construction -----------------
def make_positional_encoding(seq_len, d_model):
    position = np.arange(seq_len, dtype=np.float32)[:, None]
    div_term = np.exp(np.arange(0, d_model, 2, dtype=np.float32)
                      * (-math.log(10000.0) / d_model))
    pe = np.zeros((seq_len, d_model), dtype=np.float32)
    pe[:, 0::2] = np.sin(position * div_term)
    pe[:, 1::2] = np.cos(position * div_term)
    return jnp.asarray(pe)


def init_params(key):
    ks = jax.random.split(key, 12)

    def w(k, shape, scale=0.1):
        return (scale * jax.random.normal(k, shape)).astype(jnp.float32)

    return dict(
        in_w=w(ks[0], (NUM_LAYERS, 3 * E, E)),        # MHA in_proj_weight
        in_b=w(ks[1], (NUM_LAYERS, 3 * E)),           # MHA in_proj_bias
        op_w=w(ks[2], (NUM_LAYERS, E, E)),            # MHA out_proj.weight
        op_b=w(ks[3], (NUM_LAYERS, E)),               # MHA out_proj.bias
        n1_w=jnp.ones((NUM_LAYERS, E), jnp.float32),  # norm1 weight/bias
        n1_b=jnp.zeros((NUM_LAYERS, E), jnp.float32),
        n2_w=jnp.ones((NUM_LAYERS, E), jnp.float32),  # norm2 weight/bias
        n2_b=jnp.zeros((NUM_LAYERS, E), jnp.float32),
        f1_w=w(ks[4], (NUM_LAYERS, HIDDEN, E)),       # linear1
        f1_b=w(ks[5], (NUM_LAYERS, HIDDEN)),
        f2_w=w(ks[6], (NUM_LAYERS, E, HIDDEN)),       # linear2
        f2_b=w(ks[7], (NUM_LAYERS, E)),
        doc_w=w(ks[8], (HIDDEN, DOC_DIM)),            # doc_fc
        doc_b=w(ks[9], (1, HIDDEN)),
        fc_w=w(ks[10], (OUT_DIM, E + HIDDEN)),        # fc
        fc_b=w(ks[11], (1, OUT_DIM)),
    )


# ----------------------------- pure-JAX reference --------------------------------
def reference_forward(seq, doc, pe, p):
    def ln(x, w, b):
        mu = x.mean(-1, keepdims=True)
        var = ((x - mu) ** 2).mean(-1, keepdims=True)
        return (x - mu) / jnp.sqrt(var + EPS) * w + b

    x = seq + pe[None]
    for l in range(NUM_LAYERS):
        qkv = x @ p["in_w"][l].T + p["in_b"][l]
        q, k, v = qkv[..., :E], qkv[..., E:2 * E], qkv[..., 2 * E:]
        split = lambda t: t.reshape(B, S, NUM_HEADS, HEAD_DIM).transpose(0, 2, 1, 3)
        qh, kh, vh = split(q), split(k), split(v)
        sc = jnp.einsum("bhqd,bhkd->bhqk", qh, kh) / math.sqrt(HEAD_DIM)
        pw = jax.nn.softmax(sc, axis=-1)
        a = jnp.einsum("bhqk,bhkd->bhqd", pw, vh).transpose(0, 2, 1, 3).reshape(B, S, E)
        a = a @ p["op_w"][l].T + p["op_b"][l]
        x = ln(x + a, p["n1_w"][l], p["n1_b"][l])
        h1 = jax.nn.relu(x @ p["f1_w"][l].T + p["f1_b"][l])
        h2 = h1 @ p["f2_w"][l].T + p["f2_b"][l]
        x = ln(x + h2, p["n2_w"][l], p["n2_b"][l])
    seq_emb = x.mean(axis=1)
    doc_emb = jax.nn.relu(doc @ p["doc_w"].T + p["doc_b"][0])
    combined = jnp.concatenate([seq_emb, doc_emb], axis=-1)
    return combined @ p["fc_w"].T + p["fc_b"][0]


if __name__ == "__main__":
    key = jax.random.PRNGKey(0)
    k_seq, k_doc, k_par = jax.random.split(key, 3)

    sequence = jax.random.normal(k_seq, (B, S, E), dtype=jnp.float32)
    doc_features = jax.random.normal(k_doc, (B, DOC_DIM), dtype=jnp.float32)
    pe = make_positional_encoding(S, E)
    params = init_params(k_par)

    out = transformer_forward(sequence, doc_features, pe, params)
    out = jax.block_until_ready(out)

    ref = jax.block_until_ready(reference_forward(sequence, doc_features, pe, params))
    np.testing.assert_allclose(np.asarray(out), np.asarray(ref), rtol=2e-2, atol=2e-2)

    print("KERNEL_OK")
</pallas_src>

<mosaic_0001>
module attributes {stable_mosaic.version = 11 : i64} {
  func.func @transformer_kernel(%arg0: memref<16x16xf32, #tpu.memory_space<vmem>>, %arg1: memref<2x8xf32, #tpu.memory_space<vmem>>, %arg2: memref<2x16x96xf32, #tpu.memory_space<vmem>>, %arg3: memref<120x32xf32, #tpu.memory_space<vmem>>, %arg4: memref<52x48xf32, #tpu.memory_space<vmem>>, %arg5: memref<2x4xf32, #tpu.memory_space<vmem>>) attributes {dimension_semantics = [], scalar_prefetch = 0 : i64, scratch_operands = 0 : i64, tpu.core_type = #tpu.core_type<tc>} {
    %c0 = arith.constant 0 : index
    %c0_0 = arith.constant 0 : index
    %0 = vector.load %arg4[%c0, %c0_0] : memref<52x48xf32, #tpu.memory_space<vmem>>, vector<52x48xf32>
    %c0_1 = arith.constant 0 : index
    %c0_2 = arith.constant 0 : index
    %1 = vector.load %arg3[%c0_1, %c0_2] : memref<120x32xf32, #tpu.memory_space<vmem>>, vector<120x32xf32>
    %c0_3 = arith.constant 0 : index
    %c0_4 = arith.constant 0 : index
    %2 = vector.load %arg0[%c0_3, %c0_4] : memref<16x16xf32, #tpu.memory_space<vmem>>, vector<16x16xf32>
    %3 = vector.extract_strided_slice %0 {offsets = [18, 0], sizes = [16, 16], strides = [1, 1]} : vector<52x48xf32> to vector<16x16xf32>
    %4 = arith.addf %2, %3 : vector<16x16xf32>
    %5 = vector.extract_strided_slice %0 {offsets = [34, 0], sizes = [16, 16], strides = [1, 1]} : vector<52x48xf32> to vector<16x16xf32>
    %6 = vector.extract_strided_slice %0 {offsets = [50, 0], sizes = [2, 16], strides = [1, 1]} : vector<52x48xf32> to vector<2x16xf32>
    %c0_5 = arith.constant 0 : index
    %c0_6 = arith.constant 0 : index
    %c0_7 = arith.constant 0 : index
    %7 = vector.load %arg2[%c0_5, %c0_6, %c0_7] : memref<2x16x96xf32, #tpu.memory_space<vmem>>, vector<1x16x96xf32>
    %8 = vector.shape_cast %7 : vector<1x16x96xf32> to vector<16x96xf32>
    %9 = vector.extract_strided_slice %0 {offsets = [0, 0], sizes = [1, 48], strides = [1, 1]} : vector<52x48xf32> to vector<1x48xf32>
    %10 = vector.extract_strided_slice %0 {offsets = [1, 0], sizes = [1, 16], strides = [1, 1]} : vector<52x48xf32> to vector<1x16xf32>
    %11 = vector.extract_strided_slice %0 {offsets = [2, 0], sizes = [1, 16], strides = [1, 1]} : vector<52x48xf32> to vector<1x16xf32>
    %12 = vector.extract_strided_slice %0 {offsets = [3, 0], sizes = [1, 16], strides = [1, 1]} : vector<52x48xf32> to vector<1x16xf32>
    %13 = vector.extract_strided_slice %0 {offsets = [4, 0], sizes = [1, 16], strides = [1, 1]} : vector<52x48xf32> to vector<1x16xf32>
    %14 = vector.extract_strided_slice %0 {offsets = [5, 0], sizes = [1, 16], strides = [1, 1]} : vector<52x48xf32> to vector<1x16xf32>
    %15 = vector.extract_strided_slice %0 {offsets = [6, 0], sizes = [1, 32], strides = [1, 1]} : vector<52x48xf32> to vector<1x32xf32>
    %16 = vector.extract_strided_slice %0 {offsets = [7, 0], sizes = [1, 16], strides = [1, 1]} : vector<52x48xf32> to vector<1x16xf32>
    %17 = vector.extract_strided_slice %8 {offsets = [0, 0], sizes = [16, 48], strides = [1, 1]} : vector<16x96xf32> to vector<16x48xf32>
    %cst = arith.constant dense<0.000000e+00> : vector<16x48xf32>
    %18 = tpu.matmul %4, %17, %cst {dimension_numbers = #tpu.dot_dimension_numbers<[1], [0], [0], [1], [0, 0, 1, 1], [], []>} : vector<16x16xf32>, vector<16x48xf32>, vector<16x48xf32> -> vector<16x48xf32>
    %19 = vector.broadcast %9 : vector<1x48xf32> to vector<16x48xf32>
    %20 = arith.addf %18, %19 : vector<16x48xf32>
    %21 = vector.extract_strided_slice %8 {offsets = [0, 48], sizes = [16, 16], strides = [1, 1]} : vector<16x96xf32> to vector<16x16xf32>
    %cst_8 = arith.constant 0.000000e+00 : f32
    %22 = vector.broadcast %cst_8 : f32 to vector<16x16xf32>
    %23 = vector.extract_strided_slice %20 {offsets = [0, 0], sizes = [16, 8], strides = [1, 1]} : vector<16x48xf32> to vector<16x8xf32>
    %24 = vector.extract_strided_slice %20 {offsets = [0, 16], sizes = [16, 8], strides = [1, 1]} : vector<16x48xf32> to vector<16x8xf32>
    %25 = vector.extract_strided_slice %20 {offsets = [0, 32], sizes = [16, 8], strides = [1, 1]} : vector<16x48xf32> to vector<16x8xf32>
    %cst_9 = arith.constant dense<0.000000e+00> : vector<16x16xf32>
    %26 = tpu.matmul %23, %24, %cst_9 {dimension_numbers = #tpu.dot_dimension_numbers<[1], [1], [0], [0], [0, 0, 1, 0], [], []>} : vector<16x8xf32>, vector<16x8xf32>, vector<16x16xf32> -> vector<16x16xf32>
    %27 = arith.addf %26, %5 : vector<16x16xf32>
    %cst_10 = arith.constant dense<0xFF800000> : vector<16xf32>
    %28 = vector.multi_reduction <maximumf>, %27, %cst_10 [1] : vector<16x16xf32> to vector<16xf32>
    %29 = vector.shape_cast %28 : vector<16xf32> to vector<16x1xf32>
    %30 = vector.broadcast %29 : vector<16x1xf32> to vector<16x16xf32>
    %31 = arith.subf %27, %30 : vector<16x16xf32>
    %32 = math.exp %31 : vector<16x16xf32>
    %cst_11 = arith.constant dense<0.000000e+00> : vector<16xf32>
    %33 = vector.multi_reduction <add>, %32, %cst_11 [1] : vector<16x16xf32> to vector<16xf32>
    %34 = vector.shape_cast %33 : vector<16xf32> to vector<16x1xf32>
    %35 = tpu.reciprocal %34 {approx = true} : vector<16x1xf32> -> vector<16x1xf32>
    %36 = vector.broadcast %35 : vector<16x1xf32> to vector<16x16xf32>
    %37 = arith.mulf %32, %36 : vector<16x16xf32>
    %cst_12 = arith.constant dense<0.000000e+00> : vector<16x8xf32>
    %38 = tpu.matmul %37, %25, %cst_12 {dimension_numbers = #tpu.dot_dimension_numbers<[1], [0], [0], [1], [0, 0, 1, 1], [], []>} : vector<16x16xf32>, vector<16x8xf32>, vector<16x8xf32> -> vector<16x8xf32>
    %39 = vector.extract_strided_slice %21 {offsets = [0, 0], sizes = [8, 16], strides = [1, 1]} : vector<16x16xf32> to vector<8x16xf32>
    %cst_13 = arith.constant dense<0.000000e+00> : vector<16x16xf32>
    %40 = tpu.matmul %38, %39, %cst_13 {dimension_numbers = #tpu.dot_dimension_numbers<[1], [0], [0], [1], [0, 0, 1, 1], [], []>} : vector<16x8xf32>, vector<8x16xf32>, vector<16x16xf32> -> vector<16x16xf32>
    %41 = arith.addf %22, %40 : vector<16x16xf32>
    %42 = vector.extract_strided_slice %20 {offsets = [0, 8], sizes = [16, 8], strides = [1, 1]} : vector<16x48xf32> to vector<16x8xf32>
    %43 = vector.extract_strided_slice %20 {offsets = [0, 24], sizes = [16, 8], strides = [1, 1]} : vector<16x48xf32> to vector<16x8xf32>
    %44 = vector.extract_strided_slice %20 {offsets = [0, 40], sizes = [16, 8], strides = [1, 1]} : vector<16x48xf32> to vector<16x8xf32>
    %cst_14 = arith.constant dense<0.000000e+00> : vector<16x16xf32>
    %45 = tpu.matmul %42, %43, %cst_14 {dimension_numbers = #tpu.dot_dimension_numbers<[1], [1], [0], [0], [0, 0, 1, 0], [], []>} : vector<16x8xf32>, vector<16x8xf32>, vector<16x16xf32> -> vector<16x16xf32>
    %46 = arith.addf %45, %5 : vector<16x16xf32>
    %cst_15 = arith.constant dense<0xFF800000> : vector<16xf32>
    %47 = vector.multi_reduction <maximumf>, %46, %cst_15 [1] : vector<16x16xf32> to vector<16xf32>
    %48 = vector.shape_cast %47 : vector<16xf32> to vector<16x1xf32>
    %49 = vector.broadcast %48 : vector<16x1xf32> to vector<16x16xf32>
    %50 = arith.subf %46, %49 : vector<16x16xf32>
    %51 = math.exp %50 : vector<16x16xf32>
    %cst_16 = arith.constant dense<0.000000e+00> : vector<16xf32>
    %52 = vector.multi_reduction <add>, %51, %cst_16 [1] : vector<16x16xf32> to vector<16xf32>
    %53 = vector.shape_cast %52 : vector<16xf32> to vector<16x1xf32>
    %54 = tpu.reciprocal %53 {approx = true} : vector<16x1xf32> -> vector<16x1xf32>
    %55 = vector.broadcast %54 : vector<16x1xf32> to vector<16x16xf32>
    %56 = arith.mulf %51, %55 : vector<16x16xf32>
    %cst_17 = arith.constant dense<0.000000e+00> : vector<16x8xf32>
    %57 = tpu.matmul %56, %44, %cst_17 {dimension_numbers = #tpu.dot_dimension_numbers<[1], [0], [0], [1], [0, 0, 1, 1], [], []>} : vector<16x16xf32>, vector<16x8xf32>, vector<16x8xf32> -> vector<16x8xf32>
    %58 = vector.extract_strided_slice %21 {offsets = [8, 0], sizes = [8, 16], strides = [1, 1]} : vector<16x16xf32> to vector<8x16xf32>
    %cst_18 = arith.constant dense<0.000000e+00> : vector<16x16xf32>
    %59 = tpu.matmul %57, %58, %cst_18 {dimension_numbers = #tpu.dot_dimension_numbers<[1], [0], [0], [1], [0, 0, 1, 1], [], []>} : vector<16x8xf32>, vector<8x16xf32>, vector<16x16xf32> -> vector<16x16xf32>
    %60 = arith.addf %41, %59 : vector<16x16xf32>
    %61 = vector.broadcast %10 : vector<1x16xf32> to vector<16x16xf32>
    %62 = arith.addf %60, %61 : vector<16x16xf32>
    %63 = arith.addf %4, %62 : vector<16x16xf32>
    %cst_19 = arith.constant dense<0.000000e+00> : vector<16xf32>
    %64 = vector.multi_reduction <add>, %63, %cst_19 [1] : vector<16x16xf32> to vector<16xf32>
    %65 = vector.shape_cast %64 : vector<16xf32> to vector<16x1xf32>
    %cst_20 = arith.constant 1.600000e+01 : f32
    %66 = vector.broadcast %cst_20 : f32 to vector<16x1xf32>
    %67 = arith.divf %65, %66 : vector<16x1xf32>
    %68 = vector.broadcast %67 : vector<16x1xf32> to vector<16x16xf32>
    %69 = arith.subf %63, %68 : vector<16x16xf32>
    %70 = arith.mulf %69, %69 : vector<16x16xf32>
    %cst_21 = arith.constant dense<0.000000e+00> : vector<16xf32>
    %71 = vector.multi_reduction <add>, %70, %cst_21 [1] : vector<16x16xf32> to vector<16xf32>
    %72 = vector.shape_cast %71 : vector<16xf32> to vector<16x1xf32>
    %cst_22 = arith.constant 1.600000e+01 : f32
    %73 = vector.broadcast %cst_22 : f32 to vector<16x1xf32>
    %74 = arith.divf %72, %73 : vector<16x1xf32>
    %75 = vector.broadcast %67 : vector<16x1xf32> to vector<16x16xf32>
    %76 = arith.subf %63, %75 : vector<16x16xf32>
    %cst_23 = arith.constant 9.99999974E-6 : f32
    %77 = vector.broadcast %cst_23 : f32 to vector<16x1xf32>
    %78 = arith.addf %74, %77 : vector<16x1xf32>
    %79 = math.rsqrt %78 : vector<16x1xf32>
    %80 = vector.broadcast %79 : vector<16x1xf32> to vector<16x16xf32>
    %81 = arith.mulf %76, %80 : vector<16x16xf32>
    %82 = vector.broadcast %11 : vector<1x16xf32> to vector<16x16xf32>
    %83 = arith.mulf %81, %82 : vector<16x16xf32>
    %84 = vector.broadcast %12 : vector<1x16xf32> to vector<16x16xf32>
    %85 = arith.addf %83, %84 : vector<16x16xf32>
    %86 = vector.extract_strided_slice %8 {offsets = [0, 64], sizes = [16, 32], strides = [1, 1]} : vector<16x96xf32> to vector<16x32xf32>
    %87 = vector.extract_strided_slice %1 {offsets = [0, 0], sizes = [32, 16], strides = [1, 1]} : vector<120x32xf32> to vector<32x16xf32>
    %cst_24 = arith.constant dense<0.000000e+00> : vector<16x32xf32>
    %88 = tpu.matmul %85, %86, %cst_24 {dimension_numbers = #tpu.dot_dimension_numbers<[1], [0], [0], [1], [0, 0, 1, 1], [], []>} : vector<16x16xf32>, vector<16x32xf32>, vector<16x32xf32> -> vector<16x32xf32>
    %89 = vector.broadcast %15 : vector<1x32xf32> to vector<16x32xf32>
    %90 = arith.addf %88, %89 : vector<16x32xf32>
    %cst_25 = arith.constant 0.000000e+00 : f32
    %91 = vector.broadcast %cst_25 : f32 to vector<16x32xf32>
    %92 = arith.maximumf %90, %91 : vector<16x32xf32>
    %cst_26 = arith.constant dense<0.000000e+00> : vector<16x16xf32>
    %93 = tpu.matmul %92, %87, %cst_26 {dimension_numbers = #tpu.dot_dimension_numbers<[1], [0], [0], [1], [0, 0, 1, 1], [], []>} : vector<16x32xf32>, vector<32x16xf32>, vector<16x16xf32> -> vector<16x16xf32>
    %94 = vector.broadcast %16 : vector<1x16xf32> to vector<16x16xf32>
    %95 = arith.addf %93, %94 : vector<16x16xf32>
    %96 = arith.addf %85, %95 : vector<16x16xf32>
    %cst_27 = arith.constant dense<0.000000e+00> : vector<16xf32>
    %97 = vector.multi_reduction <add>, %96, %cst_27 [1] : vector<16x16xf32> to vector<16xf32>
    %98 = vector.shape_cast %97 : vector<16xf32> to vector<16x1xf32>
    %cst_28 = arith.constant 1.600000e+01 : f32
    %99 = vector.broadcast %cst_28 : f32 to vector<16x1xf32>
    %100 = arith.divf %98, %99 : vector<16x1xf32>
    %101 = vector.broadcast %100 : vector<16x1xf32> to vector<16x16xf32>
    %102 = arith.subf %96, %101 : vector<16x16xf32>
    %103 = arith.mulf %102, %102 : vector<16x16xf32>
    %cst_29 = arith.constant dense<0.000000e+00> : vector<16xf32>
    %104 = vector.multi_reduction <add>, %103, %cst_29 [1] : vector<16x16xf32> to vector<16xf32>
    %105 = vector.shape_cast %104 : vector<16xf32> to vector<16x1xf32>
    %cst_30 = arith.constant 1.600000e+01 : f32
    %106 = vector.broadcast %cst_30 : f32 to vector<16x1xf32>
    %107 = arith.divf %105, %106 : vector<16x1xf32>
    %108 = vector.broadcast %100 : vector<16x1xf32> to vector<16x16xf32>
    %109 = arith.subf %96, %108 : vector<16x16xf32>
    %cst_31 = arith.constant 9.99999974E-6 : f32
    %110 = vector.broadcast %cst_31 : f32 to vector<16x1xf32>
    %111 = arith.addf %107, %110 : vector<16x1xf32>
    %112 = math.rsqrt %111 : vector<16x1xf32>
    %113 = vector.broadcast %112 : vector<16x1xf32> to vector<16x16xf32>
    %114 = arith.mulf %109, %113 : vector<16x16xf32>
    %115 = vector.broadcast %13 : vector<1x16xf32> to vector<16x16xf32>
    %116 = arith.mulf %114, %115 : vector<16x16xf32>
    %117 = vector.broadcast %14 : vector<1x16xf32> to vector<16x16xf32>
    %118 = arith.addf %116, %117 : vector<16x16xf32>
    %c1 = arith.constant 1 : index
    %c0_32 = arith.constant 0 : index
    %c0_33 = arith.constant 0 : index
    %119 = vector.load %arg2[%c1, %c0_32, %c0_33] : memref<2x16x96xf32, #tpu.memory_space<vmem>>, vector<1x16x96xf32>
    %120 = vector.shape_cast %119 : vector<1x16x96xf32> to vector<16x96xf32>
    %121 = vector.extract_strided_slice %0 {offsets = [8, 0], sizes = [1, 48], strides = [1, 1]} : vector<52x48xf32> to vector<1x48xf32>
    %122 = vector.extract_strided_slice %0 {offsets = [9, 0], sizes = [1, 16], strides = [1, 1]} : vector<52x48xf32> to vector<1x16xf32>
    %123 = vector.extract_strided_slice %0 {offsets = [10, 0], sizes = [1, 16], strides = [1, 1]} : vector<52x48xf32> to vector<1x16xf32>
    %124 = vector.extract_strided_slice %0 {offsets = [11, 0], sizes = [1, 16], strides = [1, 1]} : vector<52x48xf32> to vector<1x16xf32>
    %125 = vector.extract_strided_slice %0 {offsets = [12, 0], sizes = [1, 16], strides = [1, 1]} : vector<52x48xf32> to vector<1x16xf32>
    %126 = vector.extract_strided_slice %0 {offsets = [13, 0], sizes = [1, 16], strides = [1, 1]} : vector<52x48xf32> to vector<1x16xf32>
    %127 = vector.extract_strided_slice %0 {offsets = [14, 0], sizes = [1, 32], strides = [1, 1]} : vector<52x48xf32> to vector<1x32xf32>
    %128 = vector.extract_strided_slice %0 {offsets = [15, 0], sizes = [1, 16], strides = [1, 1]} : vector<52x48xf32> to vector<1x16xf32>
    %129 = vector.extract_strided_slice %120 {offsets = [0, 0], sizes = [16, 48], strides = [1, 1]} : vector<16x96xf32> to vector<16x48xf32>
    %cst_34 = arith.constant dense<0.000000e+00> : vector<16x48xf32>
    %130 = tpu.matmul %118, %129, %cst_34 {dimension_numbers = #tpu.dot_dimension_numbers<[1], [0], [0], [1], [0, 0, 1, 1], [], []>} : vector<16x16xf32>, vector<16x48xf32>, vector<16x48xf32> -> vector<16x48xf32>
    %131 = vector.broadcast %121 : vector<1x48xf32> to vector<16x48xf32>
    %132 = arith.addf %130, %131 : vector<16x48xf32>
    %133 = vector.extract_strided_slice %120 {offsets = [0, 48], sizes = [16, 16], strides = [1, 1]} : vector<16x96xf32> to vector<16x16xf32>
    %cst_35 = arith.constant 0.000000e+00 : f32
    %134 = vector.broadcast %cst_35 : f32 to vector<16x16xf32>
    %135 = vector.extract_strided_slice %132 {offsets = [0, 0], sizes = [16, 8], strides = [1, 1]} : vector<16x48xf32> to vector<16x8xf32>
    %136 = vector.extract_strided_slice %132 {offsets = [0, 16], sizes = [16, 8], strides = [1, 1]} : vector<16x48xf32> to vector<16x8xf32>
    %137 = vector.extract_strided_slice %132 {offsets = [0, 32], sizes = [16, 8], strides = [1, 1]} : vector<16x48xf32> to vector<16x8xf32>
    %cst_36 = arith.constant dense<0.000000e+00> : vector<16x16xf32>
    %138 = tpu.matmul %135, %136, %cst_36 {dimension_numbers = #tpu.dot_dimension_numbers<[1], [1], [0], [0], [0, 0, 1, 0], [], []>} : vector<16x8xf32>, vector<16x8xf32>, vector<16x16xf32> -> vector<16x16xf32>
    %139 = arith.addf %138, %5 : vector<16x16xf32>
    %cst_37 = arith.constant dense<0xFF800000> : vector<16xf32>
    %140 = vector.multi_reduction <maximumf>, %139, %cst_37 [1] : vector<16x16xf32> to vector<16xf32>
    %141 = vector.shape_cast %140 : vector<16xf32> to vector<16x1xf32>
    %142 = vector.broadcast %141 : vector<16x1xf32> to vector<16x16xf32>
    %143 = arith.subf %139, %142 : vector<16x16xf32>
    %144 = math.exp %143 : vector<16x16xf32>
    %cst_38 = arith.constant dense<0.000000e+00> : vector<16xf32>
    %145 = vector.multi_reduction <add>, %144, %cst_38 [1] : vector<16x16xf32> to vector<16xf32>
    %146 = vector.shape_cast %145 : vector<16xf32> to vector<16x1xf32>
    %147 = tpu.reciprocal %146 {approx = true} : vector<16x1xf32> -> vector<16x1xf32>
    %148 = vector.broadcast %147 : vector<16x1xf32> to vector<16x16xf32>
    %149 = arith.mulf %144, %148 : vector<16x16xf32>
    %cst_39 = arith.constant dense<0.000000e+00> : vector<16x8xf32>
    %150 = tpu.matmul %149, %137, %cst_39 {dimension_numbers = #tpu.dot_dimension_numbers<[1], [0], [0], [1], [0, 0, 1, 1], [], []>} : vector<16x16xf32>, vector<16x8xf32>, vector<16x8xf32> -> vector<16x8xf32>
    %151 = vector.extract_strided_slice %133 {offsets = [0, 0], sizes = [8, 16], strides = [1, 1]} : vector<16x16xf32> to vector<8x16xf32>
    %cst_40 = arith.constant dense<0.000000e+00> : vector<16x16xf32>
    %152 = tpu.matmul %150, %151, %cst_40 {dimension_numbers = #tpu.dot_dimension_numbers<[1], [0], [0], [1], [0, 0, 1, 1], [], []>} : vector<16x8xf32>, vector<8x16xf32>, vector<16x16xf32> -> vector<16x16xf32>
    %153 = arith.addf %134, %152 : vector<16x16xf32>
    %154 = vector.extract_strided_slice %132 {offsets = [0, 8], sizes = [16, 8], strides = [1, 1]} : vector<16x48xf32> to vector<16x8xf32>
    %155 = vector.extract_strided_slice %132 {offsets = [0, 24], sizes = [16, 8], strides = [1, 1]} : vector<16x48xf32> to vector<16x8xf32>
    %156 = vector.extract_strided_slice %132 {offsets = [0, 40], sizes = [16, 8], strides = [1, 1]} : vector<16x48xf32> to vector<16x8xf32>
    %cst_41 = arith.constant dense<0.000000e+00> : vector<16x16xf32>
    %157 = tpu.matmul %154, %155, %cst_41 {dimension_numbers = #tpu.dot_dimension_numbers<[1], [1], [0], [0], [0, 0, 1, 0], [], []>} : vector<16x8xf32>, vector<16x8xf32>, vector<16x16xf32> -> vector<16x16xf32>
    %158 = arith.addf %157, %5 : vector<16x16xf32>
    %cst_42 = arith.constant dense<0xFF800000> : vector<16xf32>
    %159 = vector.multi_reduction <maximumf>, %158, %cst_42 [1] : vector<16x16xf32> to vector<16xf32>
    %160 = vector.shape_cast %159 : vector<16xf32> to vector<16x1xf32>
    %161 = vector.broadcast %160 : vector<16x1xf32> to vector<16x16xf32>
    %162 = arith.subf %158, %161 : vector<16x16xf32>
    %163 = math.exp %162 : vector<16x16xf32>
    %cst_43 = arith.constant dense<0.000000e+00> : vector<16xf32>
    %164 = vector.multi_reduction <add>, %163, %cst_43 [1] : vector<16x16xf32> to vector<16xf32>
    %165 = vector.shape_cast %164 : vector<16xf32> to vector<16x1xf32>
    %166 = tpu.reciprocal %165 {approx = true} : vector<16x1xf32> -> vector<16x1xf32>
    %167 = vector.broadcast %166 : vector<16x1xf32> to vector<16x16xf32>
    %168 = arith.mulf %163, %167 : vector<16x16xf32>
    %cst_44 = arith.constant dense<0.000000e+00> : vector<16x8xf32>
    %169 = tpu.matmul %168, %156, %cst_44 {dimension_numbers = #tpu.dot_dimension_numbers<[1], [0], [0], [1], [0, 0, 1, 1], [], []>} : vector<16x16xf32>, vector<16x8xf32>, vector<16x8xf32> -> vector<16x8xf32>
    %170 = vector.extract_strided_slice %133 {offsets = [8, 0], sizes = [8, 16], strides = [1, 1]} : vector<16x16xf32> to vector<8x16xf32>
    %cst_45 = arith.constant dense<0.000000e+00> : vector<16x16xf32>
    %171 = tpu.matmul %169, %170, %cst_45 {dimension_numbers = #tpu.dot_dimension_numbers<[1], [0], [0], [1], [0, 0, 1, 1], [], []>} : vector<16x8xf32>, vector<8x16xf32>, vector<16x16xf32> -> vector<16x16xf32>
    %172 = arith.addf %153, %171 : vector<16x16xf32>
    %173 = vector.broadcast %122 : vector<1x16xf32> to vector<16x16xf32>
    %174 = arith.addf %172, %173 : vector<16x16xf32>
    %175 = arith.addf %118, %174 : vector<16x16xf32>
    %cst_46 = arith.constant dense<0.000000e+00> : vector<16xf32>
    %176 = vector.multi_reduction <add>, %175, %cst_46 [1] : vector<16x16xf32> to vector<16xf32>
    %177 = vector.shape_cast %176 : vector<16xf32> to vector<16x1xf32>
    %cst_47 = arith.constant 1.600000e+01 : f32
    %178 = vector.broadcast %cst_47 : f32 to vector<16x1xf32>
    %179 = arith.divf %177, %178 : vector<16x1xf32>
    %180 = vector.broadcast %179 : vector<16x1xf32> to vector<16x16xf32>
    %181 = arith.subf %175, %180 : vector<16x16xf32>
    %182 = arith.mulf %181, %181 : vector<16x16xf32>
    %cst_48 = arith.constant dense<0.000000e+00> : vector<16xf32>
    %183 = vector.multi_reduction <add>, %182, %cst_48 [1] : vector<16x16xf32> to vector<16xf32>
    %184 = vector.shape_cast %183 : vector<16xf32> to vector<16x1xf32>
    %cst_49 = arith.constant 1.600000e+01 : f32
    %185 = vector.broadcast %cst_49 : f32 to vector<16x1xf32>
    %186 = arith.divf %184, %185 : vector<16x1xf32>
    %187 = vector.broadcast %179 : vector<16x1xf32> to vector<16x16xf32>
    %188 = arith.subf %175, %187 : vector<16x16xf32>
    %cst_50 = arith.constant 9.99999974E-6 : f32
    %189 = vector.broadcast %cst_50 : f32 to vector<16x1xf32>
    %190 = arith.addf %186, %189 : vector<16x1xf32>
    %191 = math.rsqrt %190 : vector<16x1xf32>
    %192 = vector.broadcast %191 : vector<16x1xf32> to vector<16x16xf32>
    %193 = arith.mulf %188, %192 : vector<16x16xf32>
    %194 = vector.broadcast %123 : vector<1x16xf32> to vector<16x16xf32>
    %195 = arith.mulf %193, %194 : vector<16x16xf32>
    %196 = vector.broadcast %124 : vector<1x16xf32> to vector<16x16xf32>
    %197 = arith.addf %195, %196 : vector<16x16xf32>
    %198 = vector.extract_strided_slice %120 {offsets = [0, 64], sizes = [16, 32], strides = [1, 1]} : vector<16x96xf32> to vector<16x32xf32>
    %199 = vector.extract_strided_slice %1 {offsets = [32, 0], sizes = [32, 16], strides = [1, 1]} : vector<120x32xf32> to vector<32x16xf32>
    %cst_51 = arith.constant dense<0.000000e+00> : vector<16x32xf32>
    %200 = tpu.matmul %197, %198, %cst_51 {dimension_numbers = #tpu.dot_dimension_numbers<[1], [0], [0], [1], [0, 0, 1, 1], [], []>} : vector<16x16xf32>, vector<16x32xf32>, vector<16x32xf32> -> vector<16x32xf32>
    %201 = vector.broadcast %127 : vector<1x32xf32> to vector<16x32xf32>
    %202 = arith.addf %200, %201 : vector<16x32xf32>
    %cst_52 = arith.constant 0.000000e+00 : f32
    %203 = vector.broadcast %cst_52 : f32 to vector<16x32xf32>
    %204 = arith.maximumf %202, %203 : vector<16x32xf32>
    %cst_53 = arith.constant dense<0.000000e+00> : vector<16x16xf32>
    %205 = tpu.matmul %204, %199, %cst_53 {dimension_numbers = #tpu.dot_dimension_numbers<[1], [0], [0], [1], [0, 0, 1, 1], [], []>} : vector<16x32xf32>, vector<32x16xf32>, vector<16x16xf32> -> vector<16x16xf32>
    %206 = vector.broadcast %128 : vector<1x16xf32> to vector<16x16xf32>
    %207 = arith.addf %205, %206 : vector<16x16xf32>
    %208 = arith.addf %197, %207 : vector<16x16xf32>
    %cst_54 = arith.constant dense<0.000000e+00> : vector<16xf32>
    %209 = vector.multi_reduction <add>, %208, %cst_54 [1] : vector<16x16xf32> to vector<16xf32>
    %210 = vector.shape_cast %209 : vector<16xf32> to vector<16x1xf32>
    %cst_55 = arith.constant 1.600000e+01 : f32
    %211 = vector.broadcast %cst_55 : f32 to vector<16x1xf32>
    %212 = arith.divf %210, %211 : vector<16x1xf32>
    %213 = vector.broadcast %212 : vector<16x1xf32> to vector<16x16xf32>
    %214 = arith.subf %208, %213 : vector<16x16xf32>
    %215 = arith.mulf %214, %214 : vector<16x16xf32>
    %cst_56 = arith.constant dense<0.000000e+00> : vector<16xf32>
    %216 = vector.multi_reduction <add>, %215, %cst_56 [1] : vector<16x16xf32> to vector<16xf32>
    %217 = vector.shape_cast %216 : vector<16xf32> to vector<16x1xf32>
    %cst_57 = arith.constant 1.600000e+01 : f32
    %218 = vector.broadcast %cst_57 : f32 to vector<16x1xf32>
    %219 = arith.divf %217, %218 : vector<16x1xf32>
    %220 = vector.broadcast %212 : vector<16x1xf32> to vector<16x16xf32>
    %221 = arith.subf %208, %220 : vector<16x16xf32>
    %cst_58 = arith.constant 9.99999974E-6 : f32
    %222 = vector.broadcast %cst_58 : f32 to vector<16x1xf32>
    %223 = arith.addf %219, %222 : vector<16x1xf32>
    %224 = math.rsqrt %223 : vector<16x1xf32>
    %225 = vector.broadcast %224 : vector<16x1xf32> to vector<16x16xf32>
    %226 = arith.mulf %221, %225 : vector<16x16xf32>
    %227 = vector.broadcast %125 : vector<1x16xf32> to vector<16x16xf32>
    %228 = arith.mulf %226, %227 : vector<16x16xf32>
    %229 = vector.broadcast %126 : vector<1x16xf32> to vector<16x16xf32>
    %230 = arith.addf %228, %229 : vector<16x16xf32>
    %cst_59 = arith.constant dense<0.000000e+00> : vector<2x16xf32>
    %231 = tpu.matmul %6, %230, %cst_59 {dimension_numbers = #tpu.dot_dimension_numbers<[1], [0], [0], [1], [0, 0, 1, 1], [], []>} : vector<2x16xf32>, vector<16x16xf32>, vector<2x16xf32> -> vector<2x16xf32>
    %232 = vector.extract_strided_slice %1 {offsets = [64, 0], sizes = [8, 32], strides = [1, 1]} : vector<120x32xf32> to vector<8x32xf32>
    %233 = vector.extract_strided_slice %0 {offsets = [16, 0], sizes = [1, 32], strides = [1, 1]} : vector<52x48xf32> to vector<1x32xf32>
    %c0_60 = arith.constant 0 : index
    %c0_61 = arith.constant 0 : index
    %234 = vector.load %arg1[%c0_60, %c0_61] : memref<2x8xf32, #tpu.memory_space<vmem>>, vector<2x8xf32>
    %cst_62 = arith.constant dense<0.000000e+00> : vector<2x32xf32>
    %235 = tpu.matmul %234, %232, %cst_62 {dimension_numbers = #tpu.dot_dimension_numbers<[1], [0], [0], [1], [0, 0, 1, 1], [], []>} : vector<2x8xf32>, vector<8x32xf32>, vector<2x32xf32> -> vector<2x32xf32>
    %236 = vector.broadcast %233 : vector<1x32xf32> to vector<2x32xf32>
    %237 = arith.addf %235, %236 : vector<2x32xf32>
    %cst_63 = arith.constant 0.000000e+00 : f32
    %238 = vector.broadcast %cst_63 : f32 to vector<2x32xf32>
    %239 = arith.maximumf %237, %238 : vector<2x32xf32>
    %240 = vector.extract_strided_slice %1 {offsets = [72, 0], sizes = [48, 4], strides = [1, 1]} : vector<120x32xf32> to vector<48x4xf32>
    %241 = vector.extract_strided_slice %0 {offsets = [17, 0], sizes = [1, 4], strides = [1, 1]} : vector<52x48xf32> to vector<1x4xf32>
    %242 = vector.extract_strided_slice %240 {offsets = [0, 0], sizes = [16, 4], strides = [1, 1]} : vector<48x4xf32> to vector<16x4xf32>
    %cst_64 = arith.constant dense<0.000000e+00> : vector<2x4xf32>
    %243 = tpu.matmul %231, %242, %cst_64 {dimension_numbers = #tpu.dot_dimension_numbers<[1], [0], [0], [1], [0, 0, 1, 1], [], []>} : vector<2x16xf32>, vector<16x4xf32>, vector<2x4xf32> -> vector<2x4xf32>
    %244 = vector.extract_strided_slice %240 {offsets = [16, 0], sizes = [32, 4], strides = [1, 1]} : vector<48x4xf32> to vector<32x4xf32>
    %cst_65 = arith.constant dense<0.000000e+00> : vector<2x4xf32>
    %245 = tpu.matmul %239, %244, %cst_65 {dimension_numbers = #tpu.dot_dimension_numbers<[1], [0], [0], [1], [0, 0, 1, 1], [], []>} : vector<2x32xf32>, vector<32x4xf32>, vector<2x4xf32> -> vector<2x4xf32>
    %246 = arith.addf %243, %245 : vector<2x4xf32>
    %247 = vector.broadcast %241 : vector<1x4xf32> to vector<2x4xf32>
    %248 = arith.addf %246, %247 : vector<2x4xf32>
    %c0_66 = arith.constant 0 : index
    %c0_67 = arith.constant 0 : index
    %249 = vector.load %arg5[%c0_66, %c0_67] : memref<2x4xf32, #tpu.memory_space<vmem>>, vector<2x4xf32>
    tpu.vector_store %arg5[%c0_66, %c0_67], %248 {strides = array<i32>} : memref<2x4xf32, #tpu.memory_space<vmem>>, vector<2x4xf32>,
    return
  }
}

</mosaic_0001>

<bundles_post_ra>
// kernel: tpu_custom_call.1
= control target key start
LH: loop header
LB: loop body
LE: loop exit
PB: predicated region body
PF: predicated region fallthrough
CT: control target
= control target key end

     0   :  { %vm48_vm0 = vcmask 1045504   ;;  %s3134_s0 = inlined_call_operand.vmem [shape: f32[16,16], index: 0, kind: input, shape index: {}]   ;;  %s3135_s1 = inlined_call_operand.vmem [shape: f32[2,8], index: 1, kind: input, shape index: {}]   ;;  %s3136_s2 = inlined_call_operand.vmem [shape: f32[2,16,96], index: 2, kind: input, shape index: {}]   ;;  %s3137_s3 = inlined_call_operand.vmem [shape: f32[120,32], index: 3, kind: input, shape index: {}]   ;;  %s3138_s4 = inlined_call_operand.vmem [shape: f32[52,48], index: 4, kind: input, shape index: {}]   ;;  %s3139_s5 = inlined_call_operand.hbm [shape: f32[2,4], index: 5, kind: output, shape index: {}]  }
   0x1   :  { %v2784_v0 = vld [vmem:[%s3136_s2] sm:$0xff]  ;;  %v2789_v1 = vld [vmem:[%s3136_s2 + $0x8] sm:$0xff]  ;;  %v23_v2 = vld [vmem:[%s3138_s4 + $0x10] sm:$0xff] }
   0x2   :  { %v2518_v3 = vpack.c.bf16 %v2789_v1, %v2784_v0  ;;  %v24_v4 = vld [vmem:[%s3138_s4 + $0x18] sm:$0xff]  ;;  %v49_v5 = vrot.slane %v23_v2, 2  ;;  %v25_v6 = vld [vmem:[%s3138_s4 + $0x20] sm:$0xff]  ;;  %v44_v9 = vld [vmem:[%s3134_s0 + $0x8] sm:$0xff] }
   0x3   :  { %v43_v7 = vld [vmem:[%s3134_s0] sm:$0xff]  ;;  %v50_v8 = vrot.slane %v24_v4, 2  ;;  %v52_v10 = vrot.slane %v25_v6, 2 }
   0x4   :  { %2519 = vmatprep.subr.bf16.mxu0 %v2518_v3 }
   0x5   :  { %10 = vsyncpa [#allocation3], 0  ;;  %2521 = vmatpush3.bf16.msra.mxu0 %v2518_v3  ;;  %v51_v11 = vsel %vm48_vm0, %v49_v5, %v50_v8  ;;  %vm64_vm1 = vcmask 130048   ;;  %v53_v12 = vsel %vm48_vm0, %v50_v8, %v52_v10  ;;  %v60_v15 = vlaneseq  ;;  %v2826_v18 = vld [vmem:[%s3138_s4] sm:$0xff]  ;;  %s2740_s8 = smov 112   ;;  %v26_v30 = vld [vmem:[%s3138_s4 + $0x28] sm:$0xff] }
   0x6   :  { %v2810_v13 = vadd.f32 %v51_v11, %v43_v7  ;;  %v2812_v14 = vadd.f32 %v53_v12, %v44_v9  ;;  %vm160_vm2 = vcmask 64512   ;;  %v2852_v31 = vld [vmem:[%s3138_s4 + $0x30] sm:$0xf]  ;;  %v154_v32 = vrot.slane %v26_v30, 2  ;;  %s2741_s13 = smov 96   ;;  %s2742_s14 = smov 104  }
   0x7   :  { %v2818_v16 = vshrl.u32 %v60_v15, 7  ;;  %vm2837_vm3 = vmpackc.low %vm160_vm2, %vm160_vm2  ;;  %v156_v33 = vrot.slane %v2852_v31, 2  ;;  %s2743_s15 = smov 120   ;;  %s2744_s16 = smov 88   ;;  %vm867_vm4 = vcmask 261120   ;;  %vm2748_vm5 = vmmov 0  }
   0x8   :  { %2366 = vmatprep.mubr.msk.f32.mxu0 %vm64_vm1, %v2810_v13  ;;  %v2861_v35 = vsel %vm48_vm0, %v52_v10, %v154_v32  ;;  %s2745_s17 = smov 80   ;;  %s2746_s18 = smov 64   ;;  %v39_v31 = vld [vmem:[%s3137_s3 + $0x58] sm:$0xff]  ;;  %vm2211_vm6 = vcmask 25600  }
   0x9   :  { %2367 = vmatmul.mubr.msk.f32.vlgmr.msra.gmra.mrb[0].mxu0 %vm64_vm1, %v2812_v14  ;;  %v2821_v17 = vsub.s32 0, %v2818_v16  ;;  %v2858_v34 = vsel %vm48_vm0, %v154_v32, %v156_v33 }
   0xb   :  { %v63_v19 = vrot.slane %v2826_v18, %v2821_v17 }
  0xdc   :  { %v2368_v20 = vpop.f32.mrb[0].mxu0 }
  0xdd   :  { %v143_v21 = vadd.f32 %v2368_v20, %v63_v19  ;;  %v137_v22 = vpop.f32.mrb[1].mxu0 }
  0xde   :  { %v138_v23 = vadd.f32 %v137_v22, %v63_v19 }
  0xe0   :  { %2373 = vmatprep.mubr.msk.f32.mxu1 %vm160_vm2, %v138_v23  ;;  %v2831_v24 = vpack.i.bf16 %v143_v21, %v138_v23 }
  0xe2   :  { %2618 = vrot.lane.b32.xlu0 %v2831_v24, %s2740_s8 }
 0x154   :  { %v2619_v25 = vpop.permute.xlu0 %2618 }
 0x155   :  { %v2621_v26 = vunpack.i.h.bf16 %v2619_v25  ;;  %v2620_v27 = vunpack.i.l.bf16 %v2619_v25 }
 0x157   :  { %v2522_v29 = vpack.c.bf16 %v2621_v26, %v2620_v27 }
 0x159   :  { %2524 = vmatprep.subr.msk.bf16.mxu1 %vm2837_vm3, %v2522_v29 }
 0x15a   :  { %2527 = vmatpush3.bf16.xpose.msk.msra.mxu1 %vm2837_vm3, %v2522_v29 }
 0x161   :  { %2374 = vmatmul.mubr.msk.f32.vlgmr.msra.gmra.mrb[0].mxu1 %vm160_vm2, %v143_v21 }
 0x234   :  { %v2375_v36 = vpop.f32.mrb[0].mxu1 }
 0x235   :  { %v241_v37 = vadd.f32 %v2375_v36, %v2858_v34  ;;  %v235_v38 = vpop.f32.mrb[1].mxu1 }
 0x236   :  { %v236_v39 = vadd.f32 %v235_v38, %v2861_v35 }
 0x237   :  { %v247_v40 = vsel %vm64_vm1, %v241_v37, -inf }
 0x238   :  { %248 = vmax.xlane.f32.xlu1 %v247_v40  ;;  %v244_v41 = vsel %vm64_vm1, %v236_v39, -inf }
 0x239   :  { %245 = vmax.xlane.f32.xlu0 %v244_v41 }
 0x249   :  { %2623 = vrot.lane.b32.xlu1 %v2831_v24, %s2741_s13 }
 0x24d   :  { %2628 = vrot.lane.b32.xlu1 %v2831_v24, %s2742_s14 }
 0x24f   :  { %355 = vrot.lane.b32.xlu0 %v143_v21, %s2743_s15 }
 0x2c5   :  { %v249_v42 = vpop.xlane.xlu1 %248 }
 0x2c6   :  { %v251_v43 = vsub.f32 %v241_v37, %v249_v42  ;;  %v246_v44 = vpop.xlane.xlu0 %245 }
 0x2c7   :  { %v250_v45 = vsub.f32 %v236_v39, %v246_v44 }
 0x2c8   :  { %v254_v46 = vmul.f32 1.442695, %v251_v43 }
 0x2c9   :  { %v252_v47 = vmul.f32 1.442695, %v250_v45  ;;  %v2624_v48 = vpop.permute.xlu1 %2623 }
 0x2ca   :  { %2667 = vpow2.f32 %v254_v46  ;;  %v2626_v49 = vunpack.i.h.bf16 %v2624_v48  ;;  %v2625_v50 = vunpack.i.l.bf16 %v2624_v48  ;;  %v356_v5 = vpop.permute.xlu0 %355  ;;  %v2902_v48 = vsub.s32 1, %v2818_v16 }
 0x2cb   :  { %2669 = vpow2.f32 %v252_v47 }
 0x2cc   :  { %v2528_v51 = vpack.c.bf16 %v2626_v49, %v2625_v50  ;;  %v726_v49 = vrot.slane %v2826_v18, %v2902_v48 }
 0x2cd   :  { %v2629_v52 = vpop.permute.xlu1 %2628 }
 0x2ce   :  { %v2631_v53 = vunpack.i.h.bf16 %v2629_v52  ;;  %v2630_v54 = vunpack.i.l.bf16 %v2629_v52  ;;  %2529 = vmatprep.subr.bf16.mxu0 %v2528_v51 }
 0x2cf   :  { %2531 = vmatpush3.bf16.msra.mxu0 %v2528_v51 }
 0x2d0   :  { %v2532_v55 = vpack.c.bf16 %v2631_v53, %v2630_v54 }
 0x2d2   :  { %2534 = vmatprep.subr.msk.bf16.mxu0 %vm2837_vm3, %v2532_v55 }
 0x2d4   :  { %v2668_v56 = vpop.eup %2667 }
 0x2d5   :  { %v259_v57 = vsel %vm64_vm1, %v2668_v56, 0.0  ;;  %v2670_v58 = vpop.eup %2669 }
 0x2d6   :  { %260 = vadd.xlane.f32.xlu1 %v259_v57  ;;  %v256_v59 = vsel %vm64_vm1, %v2670_v58, 0.0 }
 0x2da   :  { %257 = vadd.xlane.f32.xlu1 %v256_v59 }
 0x2eb   :  { %353 = vrot.lane.b32.xlu1 %v138_v23, %s2743_s15 }
 0x363   :  { %v261_v60 = vpop.xlane.xlu1 %260 }
 0x364   :  { %2671 = vrcp.f32 %v261_v60 }
 0x367   :  { %v258_v61 = vpop.xlane.xlu1 %257 }
 0x368   :  { %2673 = vrcp.f32 %v258_v61 }
 0x36b   :  { %v354_v4 = vpop.permute.xlu1 %353 }
 0x36e   :  { %v2672_v62 = vpop.eup %2671 }
 0x36f   :  { %v265_v3 = vmul.f32 %v2672_v62, %v2668_v56 }
 0x372   :  { %v2674_v63 = vpop.eup %2673 }
 0x373   :  { %v264_v2 = vmul.f32 %v2674_v63, %v2670_v58 }
 0x375   :  { %2380 = vmatprep.mubr.msk.f32.mxu0 %vm64_vm1, %v264_v2 }
 0x376   :  { %2381 = vmatmul.mubr.msk.f32.vlgmr.msra.gmra.mrb[2].mxu0 %vm64_vm1, %v265_v3 }
 0x377   :  { %2537 = vmatpush3.bf16.xpose.msk.msra.mxu0 %vm2837_vm3, %v2532_v55  ;;  %2387 = vmatprep.mubr.msk.f32.mxu0 %vm160_vm2, %v354_v4 }
 0x37e   :  { %2388 = vmatmul.mubr.msk.f32.vlgmr.msra.gmra.mrb[4].mxu0 %vm160_vm2, %v356_v5 }
 0x449   :  { %v2382_v6 = vpop.f32.mrb[2].mxu0 }
 0x44a   :  { %v344_v7 = vpop.f32.mrb[3].mxu0 }
 0x451   :  { %v2389_v8 = vpop.f32.mrb[4].mxu0 }
 0x452   :  { %v441_v9 = vadd.f32 %v2389_v8, %v2858_v34  ;;  %v435_v10 = vpop.f32.mrb[5].mxu0 }
 0x453   :  { %v436_v11 = vadd.f32 %v435_v10, %v2861_v35 }
 0x454   :  { %v447_v12 = vsel %vm64_vm1, %v441_v9, -inf }
 0x455   :  { %448 = vmax.xlane.f32.xlu0 %v447_v12  ;;  %v444_v15 = vsel %vm64_vm1, %v436_v11, -inf  ;;  %v28_v12 = vld [vmem:[%s3137_s3] sm:$0xff] }
 0x456   :  { %445 = vmax.xlane.f32.xlu1 %v444_v15  ;;  %v29_v15 = vld [vmem:[%s3137_s3 + $0x8] sm:$0xff] }
 0x46b   :  { %554 = vrot.lane.b32.xlu0 %v2789_v1, %s2745_s17 }
 0x4e2   :  { %v449_v19 = vpop.xlane.xlu0 %448 }
 0x4e3   :  { %v451_v20 = vsub.f32 %v441_v9, %v449_v19  ;;  %v446_v21 = vpop.xlane.xlu1 %445 }
 0x4e4   :  { %v450_v22 = vsub.f32 %v436_v11, %v446_v21  ;;  %v760_v21 = vsub.s32 2, %v2818_v16 }
 0x4e5   :  { %v454_v23 = vmul.f32 1.442695, %v451_v20  ;;  %v2546_v20 = vpack.c.bf16 %v29_v15, %v28_v12 }
 0x4e6   :  { %v452_v25 = vmul.f32 1.442695, %v450_v22  ;;  %v555_v41 = vpop.permute.xlu0 %554  ;;  %v766_v22 = vsub.s32 3, %v2818_v16 }
 0x4e7   :  { %2675 = vpow2.f32 %v454_v23  ;;  %v761_v23 = vrot.slane %v2826_v18, %v760_v21 }
 0x4e8   :  { %2677 = vpow2.f32 %v452_v25 }
 0x4f1   :  { %v2676_v26 = vpop.eup %2675 }
 0x4f2   :  { %v459_v27 = vsel %vm64_vm1, %v2676_v26, 0.0  ;;  %v2678_v29 = vpop.eup %2677 }
 0x4f3   :  { %460 = vadd.xlane.f32.xlu1 %v459_v27  ;;  %v456_v30 = vsel %vm64_vm1, %v2678_v29, 0.0 }
 0x4f7   :  { %457 = vadd.xlane.f32.xlu1 %v456_v30  ;;  %v767_v30 = vrot.slane %v2826_v18, %v766_v22 }
 0x508   :  { %2633 = vrot.lane.b32.xlu1 %v2831_v24, %s2744_s16 }
 0x50c   :  { %639 = vrot.lane.b32.xlu1 %v2784_v0, %s2745_s17 }
 0x580   :  { %v461_v32 = vpop.xlane.xlu1 %460 }
 0x581   :  { %2679 = vrcp.f32 %v461_v32 }
 0x584   :  { %v458_v36 = vpop.xlane.xlu1 %457 }
 0x585   :  { %2681 = vrcp.f32 %v458_v36 }
 0x588   :  { %v2634_v37 = vpop.permute.xlu1 %2633 }
 0x589   :  { %v2636_v38 = vunpack.i.h.bf16 %v2634_v37  ;;  %v2635_v39 = vunpack.i.l.bf16 %v2634_v37 }
 0x58b   :  { %v2538_v40 = vpack.c.bf16 %v2636_v38, %v2635_v39  ;;  %v2680_v42 = vpop.eup %2679  ;;  %v30_v39 = vld [vmem:[%s3137_s3 + $0x10] sm:$0xff] }
 0x58c   :  { %v465_v44 = vmul.f32 %v2680_v42, %v2676_v26  ;;  %v640_v45 = vpop.permute.xlu1 %639  ;;  %v772_v42 = vsub.s32 6, %v2818_v16 }
 0x58d   :  { %2539 = vmatprep.subr.bf16.mxu1 %v2538_v40 }
 0x58e   :  { %2541 = vmatpush3.bf16.msra.mxu1 %v2538_v40  ;;  %v31_v40 = vld [vmem:[%s3137_s3 + $0x18] sm:$0xff] }
 0x58f   :  { %v2682_v24 = vpop.eup %2681  ;;  %2397 = vmatprep.subr.mxu1 %v555_v41 }
 0x590   :  { %v464_v43 = vmul.f32 %v2682_v24, %v2678_v29  ;;  %v773_v24 = vrot.slane %v2826_v18, %v772_v42 }
 0x592   :  { %2394 = vmatprep.mubr.msk.f32.mxu1 %vm64_vm1, %v464_v43 }
 0x593   :  { %2395 = vmatmul.mubr.msk.f32.vlgmr.msra.gmra.mrb[2].mxu1 %vm64_vm1, %v465_v44 }
 0x594   :  { %2398 = vmatpush3.msra.mxu1 %v555_v41  ;;  %v2550_v41 = vpack.c.bf16 %v31_v40, %v30_v39 }
 0x595   :  { %2402 = vmatprep.subr.mxu1 %v640_v45 }
 0x666   :  { %v2396_v46 = vpop.f32.mrb[2].mxu1 }
 0x667   :  { %v544_v47 = vpop.f32.mrb[3].mxu1 }
 0x668   :  { %2399 = vmatprep.mubr.msk.f32.mxu1 %vm160_vm2, %v544_v47 }
 0x669   :  { %2400 = vmatmul.mubr.msk.f32.vlgmr.msra.gmra.mrb[4].mxu1 %vm160_vm2, %v2396_v46 }
 0x66a   :  { %2403 = vmatpush3.msra.mxu1 %v640_v45  ;;  %2404 = vmatprep.mubr.msk.f32.mxu1 %vm160_vm2, %v344_v7 }
 0x671   :  { %2405 = vmatmul.mubr.msk.f32.vlgmr.msra.gmra.mrb[4].mxu1 %vm160_vm2, %v2382_v6 }
 0x744   :  { %v2406_v50 = vpop.f32.mrb[4].mxu1 }
 0x745   :  { %v728_v51 = vadd.f32 %v2406_v50, %v726_v49  ;;  %v714_v52 = vpop.f32.mrb[5].mxu1  ;;  %v865_v50 = vsub.s32 7, %v2818_v16 }
 0x746   :  { %v727_v53 = vadd.f32 %v726_v49, %v714_v52 }
 0x747   :  { %v730_v54 = vadd.f32 %v728_v51, %v2812_v14  ;;  %v866_v51 = vrot.slane %v2826_v18, %v865_v50 }
 0x748   :  { %v729_v55 = vadd.f32 %v727_v53, %v2810_v13  ;;  %v2637_v13 = vpack.i.bf16 %v2789_v1, %v2784_v0 }
 0x749   :  { %v734_v56 = vsel %vm64_vm1, %v730_v54, 0.0 }
 0x74a   :  { %735 = vadd.xlane.f32.xlu0 %v734_v56  ;;  %v731_v57 = vsel %vm64_vm1, %v729_v55, 0.0 }
 0x74b   :  { %732 = vadd.xlane.f32.xlu1 %v731_v57 }
 0x7d7   :  { %v736_v58 = vpop.xlane.xlu0 %735 }
 0x7d8   :  { %v739_v59 = vmul.f32 0.0625, %v736_v58  ;;  %v733_v60 = vpop.xlane.xlu1 %732 }
 0x7d9   :  { %v738_v61 = vmul.f32 0.0625, %v733_v60 }
 0x7da   :  { %v741_v62 = vsub.f32 %v730_v54, %v739_v59 }
 0x7db   :  { %v740_v63 = vsub.f32 %v729_v55, %v738_v61 }
 0x7dc   :  { %v743_v2 = vmul.f32 %v741_v62, %v741_v62 }
 0x7dd   :  { %v742_v3 = vmul.f32 %v740_v63, %v740_v63 }
 0x7de   :  { %v747_v4 = vsel %vm64_vm1, %v743_v2, 0.0 }
 0x7df   :  { %748 = vadd.xlane.f32.xlu0 %v747_v4  ;;  %v744_v14 = vsel %vm64_vm1, %v742_v3, 0.0 }
 0x7e0   :  { %745 = vadd.xlane.f32.xlu1 %v744_v14 }
 0x7f1   :  { %2638 = vrot.lane.b32.xlu1 %v2637_v13, %s2746_s18 }
 0x86c   :  { %v749_v5 = vpop.xlane.xlu0 %748 }
 0x86d   :  { %v751_v6 = vmul.f32 0.0625, %v749_v5  ;;  %v746_v7 = vpop.xlane.xlu1 %745 }
 0x86e   :  { %v750_v8 = vmul.f32 0.0625, %v746_v7  ;;  %v2959_v7 = vld [vmem:[%s3136_s2 + $0x18] sm:$0xff] }
 0x86f   :  { %v753_v9 = vadd.f32 1e-05, %v751_v6  ;;  %v2954_v6 = vld [vmem:[%s3136_s2 + $0x10] sm:$0xff] }
 0x870   :  { %v752_v10 = vadd.f32 1e-05, %v750_v8  ;;  %v2554_v8 = vpack.c.bf16 %v2959_v7, %v2954_v6 }
 0x871   :  { %2683 = vrsqrt.f32 %v753_v9  ;;  %v2639_v11 = vpop.permute.xlu1 %2638 }
 0x872   :  { %2685 = vrsqrt.f32 %v752_v10  ;;  %v2641_v0 = vunpack.i.h.bf16 %v2639_v11  ;;  %v2640_v1 = vunpack.i.l.bf16 %v2639_v11  ;;  %2555 = vmatprep.subr.bf16.mxu1 %v2554_v8 }
 0x873   :  { %2557 = vmatpush3.bf16.msra.mxu1 %v2554_v8 }
 0x874   :  { %v2542_v19 = vpack.c.bf16 %v2641_v0, %v2640_v1  ;;  %v979_v1 = vsub.s32 4, %v2818_v16 }
 0x876   :  { %2543 = vmatprep.subr.bf16.mxu0 %v2542_v19 }
 0x877   :  { %2545 = vmatpush3.bf16.msra.mxu0 %v2542_v19  ;;  %v985_v19 = vsub.s32 5, %v2818_v16  ;;  %v38_v16 = vld [vmem:[%s3137_s3 + $0x50] sm:$0xff] }
 0x878   :  { %2547 = vmatprep.subr.bf16.mxu0 %v2546_v20 }
 0x87b   :  { %v2684_v25 = vpop.eup %2683 }
 0x87c   :  { %v2686_v26 = vpop.eup %2685  ;;  %v757_v27 = vmul.f32 %v2684_v25, %v741_v62 }
 0x87d   :  { %v756_v29 = vmul.f32 %v2686_v26, %v740_v63  ;;  %v986_v26 = vrot.slane %v2826_v18, %v985_v19 }
 0x87e   :  { %v763_v32 = vmul.f32 %v761_v23, %v757_v27 }
 0x87f   :  { %v762_v36 = vmul.f32 %v761_v23, %v756_v29 }
 0x880   :  { %v769_v38 = vadd.f32 %v767_v30, %v763_v32 }
 0x881   :  { %v768_v37 = vadd.f32 %v767_v30, %v762_v36 }
 0x883   :  { %2411 = vmatprep.mubr.msk.f32.mxu0 %vm64_vm1, %v768_v37 }
 0x884   :  { %2412 = vmatmul.mubr.msk.f32.vlgmr.msra.gmra.mrb[6].mxu0 %vm64_vm1, %v769_v38 }
 0x885   :  { %2549 = vmatpush3.bf16.msra.mxu0 %v2546_v20  ;;  %v980_v20 = vrot.slane %v2826_v18, %v979_v1 }
 0x886   :  { %2551 = vmatprep.subr.bf16.mxu0 %v2550_v41 }
 0x889   :  { %2553 = vmatpush3.bf16.msra.mxu0 %v2550_v41 }
 0x957   :  { %v2413_v43 = vpop.f32.mrb[6].mxu0 }
 0x958   :  { %v858_v44 = vadd.f32 %v2413_v43, %v773_v24  ;;  %v852_v45 = vpop.f32.mrb[7].mxu0 }
 0x959   :  { %v853_v46 = vadd.f32 %v852_v45, %v773_v24 }
 0x95a   :  { %v862_v49 = vmax.f32 %v858_v44, 0.0 }
 0x95b   :  { %v861_v47 = vmax.f32 %v853_v46, 0.0 }
 0x95d   :  { %2422 = vmatprep.mubr.msk.f32.mxu0 %vm867_vm4, %v861_v47 }
 0x95e   :  { %2423 = vmatmul.mubr.msk.f32.vlgmr.msra.gmra.mrb[8].mxu0 %vm867_vm4, %v862_v49 }
 0xa31   :  { %v2424_v52 = vpop.f32.mrb[8].mxu0 }
 0xa32   :  { %v940_v53 = vpop.f32.mrb[9].mxu0  ;;  %v946_v54 = vadd.f32 %v2424_v52, %v866_v51 }
 0xa33   :  { %v941_v55 = vadd.f32 %v940_v53, %v866_v51 }
 0xa34   :  { %v950_v58 = vadd.f32 %v946_v54, %v769_v38  ;;  %v2982_v38 = vld [vmem:[%s3138_s4 + $0x8] sm:$0xff] }
 0xa35   :  { %v949_v56 = vadd.f32 %v941_v55, %v768_v37  ;;  %v995_v18 = vrot.slane %v2982_v38, %v2821_v17 }
 0xa36   :  { %v954_v59 = vsel %vm64_vm1, %v950_v58, 0.0 }
 0xa37   :  { %v951_v57 = vsel %vm64_vm1, %v949_v56, 0.0 }
 0xa38   :  { %952 = vadd.xlane.f32.xlu0 %v951_v57 }
 0xa3c   :  { %955 = vadd.xlane.f32.xlu0 %v954_v59 }
 0xac5   :  { %v953_v60 = vpop.xlane.xlu0 %952 }
 0xac6   :  { %v957_v61 = vmul.f32 0.0625, %v953_v60 }
 0xac8   :  { %v959_v62 = vsub.f32 %v949_v56, %v957_v61 }
 0xac9   :  { %v956_v63 = vpop.xlane.xlu0 %955 }
 0xaca   :  { %v958_v2 = vmul.f32 0.0625, %v956_v63  ;;  %v961_v3 = vmul.f32 %v959_v62, %v959_v62 }
 0xacc   :  { %v960_v4 = vsub.f32 %v950_v58, %v958_v2  ;;  %v963_v14 = vsel %vm64_vm1, %v961_v3, 0.0 }
 0xacd   :  { %964 = vadd.xlane.f32.xlu0 %v963_v14 }
 0xace   :  { %v962_v13 = vmul.f32 %v960_v4, %v960_v4 }
 0xad0   :  { %v966_v5 = vsel %vm64_vm1, %v962_v13, 0.0 }
 0xad1   :  { %967 = vadd.xlane.f32.xlu0 %v966_v5 }
 0xb5a   :  { %v965_v9 = vpop.xlane.xlu0 %964 }
 0xb5b   :  { %v969_v10 = vmul.f32 0.0625, %v965_v9 }
 0xb5d   :  { %v971_v11 = vadd.f32 1e-05, %v969_v10 }
 0xb5e   :  { %v968_v12 = vpop.xlane.xlu0 %967 }
 0xb5f   :  { %2687 = vrsqrt.f32 %v971_v11  ;;  %v970_v15 = vmul.f32 0.0625, %v968_v12 }
 0xb61   :  { %v972_v0 = vadd.f32 1e-05, %v970_v15 }
 0xb63   :  { %2689 = vrsqrt.f32 %v972_v0 }
 0xb69   :  { %v2688_v23 = vpop.eup %2687 }
 0xb6a   :  { %v975_v25 = vmul.f32 %v2688_v23, %v959_v62 }
 0xb6c   :  { %v981_v27 = vmul.f32 %v980_v20, %v975_v25 }
 0xb6d   :  { %v2690_v29 = vpop.eup %2689 }
 0xb6e   :  { %v976_v30 = vmul.f32 %v2690_v29, %v960_v4  ;;  %v2971_v32 = vadd.f32 %v986_v26, %v981_v27 }
 0xb70   :  { %v982_v36 = vmul.f32 %v980_v20, %v976_v30  ;;  %2429 = vmatprep.mubr.msk.f32.mxu1 %vm64_vm1, %v2971_v32 }
 0xb72   :  { %v2975_v37 = vadd.f32 %v986_v26, %v982_v36 }
 0xb74   :  { %2430 = vmatmul.mubr.msk.f32.vlgmr.msra.gmra.mrb[6].mxu1 %vm64_vm1, %v2975_v37 }
 0xc47   :  { %v2431_v39 = vpop.f32.mrb[6].mxu1 }
 0xc48   :  { %v1074_v40 = vadd.f32 %v2431_v39, %v995_v18  ;;  %v1068_v41 = vpop.f32.mrb[7].mxu1 }
 0xc49   :  { %v1069_v24 = vadd.f32 %v1068_v41, %v995_v18 }
 0xc4b   :  { %2436 = vmatprep.mubr.msk.f32.mxu1 %vm160_vm2, %v1069_v24  ;;  %v2987_v43 = vpack.i.bf16 %v1074_v40, %v1069_v24 }
 0xc4d   :  { %2643 = vrot.lane.b32.xlu1 %v2987_v43, %s2740_s8 }
 0xcbf   :  { %v2644_v44 = vpop.permute.xlu1 %2643 }
 0xcc0   :  { %v2646_v45 = vunpack.i.h.bf16 %v2644_v44  ;;  %v2645_v46 = vunpack.i.l.bf16 %v2644_v44 }
 0xcc2   :  { %v2558_v47 = vpack.c.bf16 %v2646_v45, %v2645_v46 }
 0xcc4   :  { %2560 = vmatprep.subr.msk.bf16.mxu1 %vm2837_vm3, %v2558_v47 }
 0xcc5   :  { %2563 = vmatpush3.bf16.xpose.msk.msra.mxu1 %vm2837_vm3, %v2558_v47 }
 0xccc   :  { %2437 = vmatmul.mubr.msk.f32.vlgmr.msra.gmra.mrb[8].mxu1 %vm160_vm2, %v1074_v40 }
 0xd9f   :  { %v2438_v49 = vpop.f32.mrb[8].mxu1 }
 0xda0   :  { %v1163_v51 = vadd.f32 %v2438_v49, %v2858_v34  ;;  %v1157_v52 = vpop.f32.mrb[9].mxu1 }
 0xda1   :  { %v1158_v53 = vadd.f32 %v1157_v52, %v2861_v35 }
 0xda2   :  { %v1169_v54 = vsel %vm64_vm1, %v1163_v51, -inf }
 0xda3   :  { %1170 = vmax.xlane.f32.xlu1 %v1169_v54  ;;  %v1166_v55 = vsel %vm64_vm1, %v1158_v53, -inf }
 0xda4   :  { %1167 = vmax.xlane.f32.xlu0 %v1166_v55 }
 0xdb4   :  { %1277 = vrot.lane.b32.xlu1 %v1074_v40, %s2743_s15 }
 0xdba   :  { %2648 = vrot.lane.b32.xlu0 %v2987_v43, %s2741_s13 }
 0xe30   :  { %v1171_v56 = vpop.xlane.xlu1 %1170 }
 0xe31   :  { %v1173_v57 = vsub.f32 %v1163_v51, %v1171_v56  ;;  %v1168_v58 = vpop.xlane.xlu0 %1167 }
 0xe32   :  { %v1172_v59 = vsub.f32 %v1158_v53, %v1168_v58 }
 0xe33   :  { %v1176_v60 = vmul.f32 1.442695, %v1173_v57 }
 0xe34   :  { %v1174_v61 = vmul.f32 1.442695, %v1172_v59  ;;  %v1278_v27 = vpop.permute.xlu1 %1277 }
 0xe35   :  { %2691 = vpow2.f32 %v1176_v60  ;;  %v2649_v62 = vpop.permute.xlu0 %2648 }
 0xe36   :  { %v2651_v63 = vunpack.i.h.bf16 %v2649_v62  ;;  %v2650_v2 = vunpack.i.l.bf16 %v2649_v62  ;;  %2693 = vpow2.f32 %v1174_v61 }
 0xe38   :  { %v2564_v3 = vpack.c.bf16 %v2651_v63, %v2650_v2 }
 0xe3a   :  { %2565 = vmatprep.subr.bf16.mxu0 %v2564_v3 }
 0xe3b   :  { %2567 = vmatpush3.bf16.msra.mxu0 %v2564_v3 }
 0xe3f   :  { %v2692_v4 = vpop.eup %2691 }
 0xe40   :  { %v1181_v14 = vsel %vm64_vm1, %v2692_v4, 0.0  ;;  %v2694_v13 = vpop.eup %2693 }
 0xe41   :  { %1182 = vadd.xlane.f32.xlu0 %v1181_v14  ;;  %v1178_v5 = vsel %vm64_vm1, %v2694_v13, 0.0 }
 0xe45   :  { %1179 = vadd.xlane.f32.xlu0 %v1178_v5 }
 0xe5b   :  { %2653 = vrot.lane.b32.xlu0 %v2987_v43, %s2742_s14 }
 0xe5f   :  { %1275 = vrot.lane.b32.xlu0 %v1069_v24, %s2743_s15 }
 0xece   :  { %v1183_v8 = vpop.xlane.xlu0 %1182 }
 0xecf   :  { %2695 = vrcp.f32 %v1183_v8 }
 0xed2   :  { %v1180_v9 = vpop.xlane.xlu0 %1179 }
 0xed3   :  { %2697 = vrcp.f32 %v1180_v9 }
 0xed6   :  { %v2654_v10 = vpop.permute.xlu0 %2653 }
 0xed7   :  { %v2656_v11 = vunpack.i.h.bf16 %v2654_v10  ;;  %v2655_v12 = vunpack.i.l.bf16 %v2654_v10 }
 0xed9   :  { %v2568_v15 = vpack.c.bf16 %v2656_v11, %v2655_v12  ;;  %v2696_v0 = vpop.eup %2695 }
 0xeda   :  { %v1187_v25 = vmul.f32 %v2696_v0, %v2692_v4  ;;  %v1276_v26 = vpop.permute.xlu0 %1275  ;;  %v1648_v4 = vrot.slane %v2982_v38, %v2902_v48 }
 0xedb   :  { %2570 = vmatprep.subr.msk.bf16.mxu0 %vm2837_vm3, %v2568_v15 }
 0xedd   :  { %v2698_v20 = vpop.eup %2697 }
 0xede   :  { %v1186_v23 = vmul.f32 %v2698_v20, %v2694_v13 }
 0xee0   :  { %2443 = vmatprep.mubr.msk.f32.mxu0 %vm64_vm1, %v1186_v23 }
 0xee1   :  { %2444 = vmatmul.mubr.msk.f32.vlgmr.msra.gmra.mrb[10].mxu0 %vm64_vm1, %v1187_v25 }
 0xee2   :  { %2573 = vmatpush3.bf16.xpose.msk.msra.mxu0 %vm2837_vm3, %v2568_v15  ;;  %2450 = vmatprep.mubr.msk.f32.mxu0 %vm160_vm2, %v1276_v26  ;;  %v2662_v15 = vpack.i.bf16 %v2959_v7, %v2954_v6 }
 0xee9   :  { %2451 = vmatmul.mubr.msk.f32.vlgmr.msra.gmra.mrb[12].mxu0 %vm160_vm2, %v1278_v27 }
 0xfb4   :  { %v2445_v29 = vpop.f32.mrb[10].mxu0 }
 0xfb5   :  { %v1266_v30 = vpop.f32.mrb[11].mxu0 }
 0xfbc   :  { %v2452_v36 = vpop.f32.mrb[12].mxu0 }
 0xfbd   :  { %v1363_v18 = vadd.f32 %v2452_v36, %v2858_v34  ;;  %v1357_v39 = vpop.f32.mrb[13].mxu0 }
 0xfbe   :  { %v1358_v40 = vadd.f32 %v1357_v39, %v2861_v35 }
 0xfbf   :  { %v1369_v41 = vsel %vm64_vm1, %v1363_v18, -inf }
 0xfc0   :  { %1370 = vmax.xlane.f32.xlu1 %v1369_v41  ;;  %v1366_v24 = vsel %vm64_vm1, %v1358_v40, -inf }
 0xfc1   :  { %1367 = vmax.xlane.f32.xlu0 %v1366_v24 }
 0xfd1   :  { %1476 = vrot.lane.b32.xlu1 %v2959_v7, %s2745_s17  ;;  %v32_v7 = vld [vmem:[%s3137_s3 + $0x20] sm:$0xff] }
0x104d   :  { %v1371_v28 = vpop.xlane.xlu1 %1370 }
0x104e   :  { %v1373_v44 = vsub.f32 %v1363_v18, %v1371_v28  ;;  %v1368_v45 = vpop.xlane.xlu0 %1367 }
0x104f   :  { %v1372_v46 = vsub.f32 %v1358_v40, %v1368_v45  ;;  %v33_v40 = vld [vmem:[%s3137_s3 + $0x28] sm:$0xff] }
0x1050   :  { %v1376_v47 = vmul.f32 1.442695, %v1373_v44  ;;  %v2582_v41 = vpack.c.bf16 %v33_v40, %v32_v7 }
0x1051   :  { %v1374_v49 = vmul.f32 1.442695, %v1372_v46  ;;  %v1477_v59 = vpop.permute.xlu1 %1476 }
0x1052   :  { %2699 = vpow2.f32 %v1376_v47 }
0x1053   :  { %2701 = vpow2.f32 %v1374_v49  ;;  %v1682_v49 = vrot.slane %v2982_v38, %v760_v21  ;;  %v34_v21 = vld [vmem:[%s3137_s3 + $0x30] sm:$0xff] }
0x105c   :  { %v2700_v34 = vpop.eup %2699 }
0x105d   :  { %v1381_v35 = vsel %vm64_vm1, %v2700_v34, 0.0  ;;  %v2702_v51 = vpop.eup %2701 }
0x105e   :  { %1382 = vadd.xlane.f32.xlu0 %v1381_v35  ;;  %v1378_v52 = vsel %vm64_vm1, %v2702_v51, 0.0 }
0x1062   :  { %1379 = vadd.xlane.f32.xlu0 %v1378_v52 }
0x1078   :  { %2658 = vrot.lane.b32.xlu0 %v2987_v43, %s2744_s16 }
0x107c   :  { %1561 = vrot.lane.b32.xlu0 %v2954_v6, %s2745_s17 }
0x10eb   :  { %v1383_v53 = vpop.xlane.xlu0 %1382 }
0x10ec   :  { %2703 = vrcp.f32 %v1383_v53 }
0x10ef   :  { %v1380_v54 = vpop.xlane.xlu0 %1379 }
0x10f0   :  { %2705 = vrcp.f32 %v1380_v54 }
0x10f3   :  { %v2659_v55 = vpop.permute.xlu0 %2658 }
0x10f4   :  { %v2661_v56 = vunpack.i.h.bf16 %v2659_v55  ;;  %v2660_v57 = vunpack.i.l.bf16 %v2659_v55 }
0x10f6   :  { %v2574_v58 = vpack.c.bf16 %v2661_v56, %v2660_v57  ;;  %v2704_v60 = vpop.eup %2703 }
0x10f7   :  { %v1387_v63 = vmul.f32 %v2704_v60, %v2700_v34  ;;  %v1562_v43 = vpop.permute.xlu0 %1561 }
0x10f8   :  { %2575 = vmatprep.subr.bf16.mxu1 %v2574_v58 }
0x10f9   :  { %2577 = vmatpush3.bf16.msra.mxu1 %v2574_v58  ;;  %v35_v58 = vld [vmem:[%s3137_s3 + $0x38] sm:$0xff] }
0x10fa   :  { %v2706_v61 = vpop.eup %2705  ;;  %2460 = vmatprep.subr.mxu1 %v1477_v59 }
0x10fb   :  { %v1386_v62 = vmul.f32 %v2706_v61, %v2702_v51  ;;  %v1688_v51 = vrot.slane %v2982_v38, %v766_v22  ;;  %v2586_v22 = vpack.c.bf16 %v35_v58, %v34_v21 }
0x10fd   :  { %2457 = vmatprep.mubr.msk.f32.mxu1 %vm64_vm1, %v1386_v62 }
0x10fe   :  { %2458 = vmatmul.mubr.msk.f32.vlgmr.msra.gmra.mrb[10].mxu1 %vm64_vm1, %v1387_v63 }
0x10ff   :  { %2461 = vmatpush3.msra.mxu1 %v1477_v59  ;;  %v1694_v59 = vrot.slane %v2982_v38, %v772_v42 }
0x1100   :  { %2465 = vmatprep.subr.mxu1 %v1562_v43 }
0x11d1   :  { %v2459_v2 = vpop.f32.mrb[10].mxu1 }
0x11d2   :  { %v1466_v3 = vpop.f32.mrb[11].mxu1 }
0x11d3   :  { %2462 = vmatprep.mubr.msk.f32.mxu1 %vm160_vm2, %v1466_v3  ;;  %v1787_v3 = vrot.slane %v2982_v38, %v865_v50 }
0x11d4   :  { %2463 = vmatmul.mubr.msk.f32.vlgmr.msra.gmra.mrb[12].mxu1 %vm160_vm2, %v2459_v2 }
0x11d5   :  { %2466 = vmatpush3.msra.mxu1 %v1562_v43  ;;  %2467 = vmatprep.mubr.msk.f32.mxu1 %vm160_vm2, %v1266_v30 }
0x11dc   :  { %2468 = vmatmul.mubr.msk.f32.vlgmr.msra.gmra.mrb[12].mxu1 %vm160_vm2, %v2445_v29 }
0x12af   :  { %v2469_v14 = vpop.f32.mrb[12].mxu1 }
0x12b0   :  { %v1650_v13 = vadd.f32 %v2469_v14, %v1648_v4  ;;  %v1636_v5 = vpop.f32.mrb[13].mxu1 }
0x12b1   :  { %v1649_v8 = vadd.f32 %v1648_v4, %v1636_v5 }
0x12b2   :  { %v1652_v9 = vadd.f32 %v1650_v13, %v2975_v37 }
0x12b3   :  { %v1651_v10 = vadd.f32 %v1649_v8, %v2971_v32 }
0x12b4   :  { %v1656_v11 = vsel %vm64_vm1, %v1652_v9, 0.0 }
0x12b5   :  { %1657 = vadd.xlane.f32.xlu1 %v1656_v11  ;;  %v1653_v12 = vsel %vm64_vm1, %v1651_v10, 0.0 }
0x12b6   :  { %1654 = vadd.xlane.f32.xlu0 %v1653_v12 }
0x12c6   :  { %2663 = vrot.lane.b32.xlu1 %v2662_v15, %s2746_s18 }
0x1342   :  { %v1658_v0 = vpop.xlane.xlu1 %1657 }
0x1343   :  { %v1660_v20 = vmul.f32 0.0625, %v1658_v0  ;;  %v1655_v23 = vpop.xlane.xlu0 %1654 }
0x1344   :  { %v1659_v25 = vmul.f32 0.0625, %v1655_v23 }
0x1345   :  { %v1662_v26 = vsub.f32 %v1652_v9, %v1660_v20 }
0x1346   :  { %v1661_v27 = vsub.f32 %v1651_v10, %v1659_v25  ;;  %v2664_v36 = vpop.permute.xlu1 %2663 }
0x1347   :  { %v1664_v29 = vmul.f32 %v1662_v26, %v1662_v26  ;;  %v2666_v18 = vunpack.i.h.bf16 %v2664_v36  ;;  %v2665_v39 = vunpack.i.l.bf16 %v2664_v36 }
0x1348   :  { %v1663_v37 = vmul.f32 %v1661_v27, %v1661_v27 }
0x1349   :  { %v1668_v30 = vsel %vm64_vm1, %v1664_v29, 0.0  ;;  %v2578_v6 = vpack.c.bf16 %v2666_v18, %v2665_v39 }
0x134a   :  { %v1665_v32 = vsel %vm64_vm1, %v1663_v37, 0.0  ;;  %v2747_v37 = vmov 0.0|0.0  }
0x134b   :  { %1666 = vadd.xlane.f32.xlu0 %v1665_v32  ;;  %2579 = vmatprep.subr.bf16.mxu0 %v2578_v6  ;;  %v2749_v32 = vmov 0.0  }
0x134c   :  { %2581 = vmatpush3.bf16.msra.mxu0 %v2578_v6  ;;  %2590 = vmatprep.subr.bf16.mxu1 %v2747_v37 }
0x134d   :  { %2583 = vmatprep.subr.bf16.mxu0 %v2582_v41  ;;  %2492 = vmatprep.mubr.msk.f32.mxu1 %vm2748_vm5, %v2749_v32 }
0x134f   :  { %1669 = vadd.xlane.f32.xlu0 %v1668_v30 }
0x13d8   :  { %v1667_v24 = vpop.xlane.xlu0 %1666 }
0x13d9   :  { %v1671_v28 = vmul.f32 0.0625, %v1667_v24 }
0x13db   :  { %v1673_v44 = vadd.f32 1e-05, %v1671_v28 }
0x13dc   :  { %v1670_v45 = vpop.xlane.xlu0 %1669 }
0x13dd   :  { %2707 = vrsqrt.f32 %v1673_v44  ;;  %v1672_v46 = vmul.f32 0.0625, %v1670_v45  ;;  %v1906_v45 = vrot.slane %v2982_v38, %v985_v19  ;;  %v1981_v19 = vld [vmem:[%s3135_s1] sm:$0x3] }
0x13df   :  { %v1674_v47 = vadd.f32 1e-05, %v1672_v46 }
0x13e1   :  { %2709 = vrsqrt.f32 %v1674_v47 }
0x13e7   :  { %v2708_v34 = vpop.eup %2707 }
0x13e8   :  { %v1677_v35 = vmul.f32 %v2708_v34, %v1661_v27 }
0x13ea   :  { %v1683_v52 = vmul.f32 %v1682_v49, %v1677_v35  ;;  %v36_v35 = vld [vmem:[%s3137_s3 + $0x40] sm:$0xff] }
0x13eb   :  { %v2710_v53 = vpop.eup %2709 }
0x13ec   :  { %v1678_v54 = vmul.f32 %v2710_v53, %v1662_v26  ;;  %v1689_v55 = vadd.f32 %v1688_v51, %v1683_v52  ;;  %v41_v52 = vld [vmem:[%s3137_s3 + $0x68] sm:$0xff]  ;;  %v42_v53 = vld [vmem:[%s3137_s3 + $0x70] sm:$0xff] }
0x13ee   :  { %v1684_v56 = vmul.f32 %v1682_v49, %v1678_v54  ;;  %2474 = vmatprep.mubr.msk.f32.mxu0 %vm64_vm1, %v1689_v55  ;;  %v2597_v54 = vpack.c.bf16 %v42_v53, %v41_v52 }
0x13f0   :  { %v1690_v57 = vadd.f32 %v1688_v51, %v1684_v56 }
0x13f2   :  { %2475 = vmatmul.mubr.msk.f32.vlgmr.msra.gmra.mrb[14].mxu0 %vm64_vm1, %v1690_v57 }
0x13f3   :  { %2585 = vmatpush3.bf16.msra.mxu0 %v2582_v41  ;;  %v1900_v41 = vrot.slane %v2982_v38, %v979_v1  ;;  %v37_v1 = vld [vmem:[%s3137_s3 + $0x48] sm:$0xff] }
0x13f4   :  { %2587 = vmatprep.subr.bf16.mxu0 %v2586_v22  ;;  %v2600_v38 = vpack.c.bf16 %v38_v16, %v37_v1 }
0x13f7   :  { %2589 = vmatpush3.bf16.msra.mxu0 %v2586_v22 }
0x13f8   :  { %2593 = vmatprep.subr.bf16.mxu0 %v2747_v37 }
0x14c5   :  { %v2476_v60 = vpop.f32.mrb[14].mxu0 }
0x14c6   :  { %v1779_v61 = vadd.f32 %v2476_v60, %v1694_v59  ;;  %v1773_v62 = vpop.f32.mrb[15].mxu0 }
0x14c7   :  { %v1774_v63 = vadd.f32 %v1773_v62, %v1694_v59 }
0x14c8   :  { %v1783_v2 = vmax.f32 %v1779_v61, 0.0 }
0x14c9   :  { %v1782_v43 = vmax.f32 %v1774_v63, 0.0 }
0x14cb   :  { %2485 = vmatprep.mubr.msk.f32.mxu0 %vm867_vm4, %v1782_v43 }
0x14cc   :  { %2486 = vmatmul.mubr.msk.f32.vlgmr.msra.gmra.mrb[16].mxu0 %vm867_vm4, %v1783_v2 }
0x14cd   :  { %2508 = vmatprep.mubr.msk.f32.mxu0 %vm2748_vm5, %v2749_v32 }
0x159f   :  { %v2487_v4 = vpop.f32.mrb[16].mxu0 }
0x15a0   :  { %v1860_v14 = vpop.f32.mrb[17].mxu0  ;;  %v1866_v13 = vadd.f32 %v2487_v4, %v1787_v3 }
0x15a1   :  { %v1861_v5 = vadd.f32 %v1860_v14, %v1787_v3 }
0x15a2   :  { %v1870_v9 = vadd.f32 %v1866_v13, %v1690_v57  ;;  %v2715_v57 = vld [vmem:[%s3138_s4 + $0x10] sm:$0xff] }
0x15a3   :  { %v1869_v8 = vadd.f32 %v1861_v5, %v1689_v55  ;;  %v1985_v21 = vrot.slane %v2715_v57, %v2821_v17  ;;  %v2209_v63 = vrot.slane %v2715_v57, %v2902_v48 }
0x15a4   :  { %v1874_v10 = vsel %vm64_vm1, %v1870_v9, 0.0 }
0x15a5   :  { %v1871_v42 = vsel %vm64_vm1, %v1869_v8, 0.0 }
0x15a6   :  { %1872 = vadd.xlane.f32.xlu0 %v1871_v42 }
0x15aa   :  { %1875 = vadd.xlane.f32.xlu0 %v1874_v10 }
0x1633   :  { %v1873_v11 = vpop.xlane.xlu0 %1872 }
0x1634   :  { %v1877_v12 = vmul.f32 0.0625, %v1873_v11 }
0x1636   :  { %v1879_v15 = vsub.f32 %v1869_v8, %v1877_v12 }
0x1637   :  { %v1876_v0 = vpop.xlane.xlu0 %1875 }
0x1638   :  { %v1878_v20 = vmul.f32 0.0625, %v1876_v0  ;;  %v1881_v23 = vmul.f32 %v1879_v15, %v1879_v15 }
0x163a   :  { %v1880_v25 = vsub.f32 %v1870_v9, %v1878_v20  ;;  %v1883_v50 = vsel %vm64_vm1, %v1881_v23, 0.0 }
0x163b   :  { %1884 = vadd.xlane.f32.xlu0 %v1883_v50 }
0x163c   :  { %v1882_v26 = vmul.f32 %v1880_v25, %v1880_v25 }
0x163e   :  { %v1886_v27 = vsel %vm64_vm1, %v1882_v26, 0.0 }
0x163f   :  { %1887 = vadd.xlane.f32.xlu0 %v1886_v27 }
0x16c8   :  { %v1885_v29 = vpop.xlane.xlu0 %1884 }
0x16c9   :  { %v1889_v30 = vmul.f32 0.0625, %v1885_v29 }
0x16cb   :  { %v1891_v36 = vadd.f32 1e-05, %v1889_v30 }
0x16cc   :  { %v1888_v18 = vpop.xlane.xlu0 %1887 }
0x16cd   :  { %2711 = vrsqrt.f32 %v1891_v36  ;;  %v1890_v39 = vmul.f32 0.0625, %v1888_v18 }
0x16cf   :  { %v1892_v6 = vadd.f32 1e-05, %v1890_v39 }
0x16d1   :  { %2713 = vrsqrt.f32 %v1892_v6 }
0x16d7   :  { %v2712_v7 = vpop.eup %2711 }
0x16d8   :  { %v1895_v40 = vmul.f32 %v2712_v7, %v1879_v15 }
0x16da   :  { %v1901_v44 = vmul.f32 %v1900_v41, %v1895_v40 }
0x16db   :  { %v2714_v24 = vpop.eup %2713 }
0x16dc   :  { %v1896_v28 = vmul.f32 %v2714_v24, %v1880_v25  ;;  %v1907_v47 = vadd.f32 %v1906_v45, %v1901_v44 }
0x16de   :  { %v1902_v46 = vmul.f32 %v1900_v41, %v1896_v28 }
0x16e0   :  { %v1908_v49 = vadd.f32 %v1906_v45, %v1902_v46 }
0x16e2   :  { %v2591_v34 = vpack.c.bf16 %v1908_v49, %v1907_v47 }
0x16e4   :  { %2592 = vmatpush3.bf16.msra.mxu1 %v2591_v34 }
0x16e5   :  { %2495 = vmatprep.subr.mxu1 %v2749_v32 }
0x16e7   :  { %2493 = vmatmul.mubr.msk.f32.vlgmr.msra.gmra.mrb[14].mxu1 %vm64_vm1, %v156_v33  ;;  %v40_v33 = vld [vmem:[%s3137_s3 + $0x60] sm:$0xff]  ;;  %s2750_s3 = smov [#allocation2]  }
0x16e8   :  { %2496 = vmatpush3.msra.mxu1 %v36_v35  ;;  %2497 = vmatprep.mubr.msk.f32.mxu1 %vm2748_vm5, %v2749_v32  ;;  %v2594_v51 = vpack.c.bf16 %v40_v33, %v39_v31  ;;  %s2219_s2 = sshll.u32 %s2750_s3, 4  ;;  %s2220_s2 = int_to_ptr.vmem [resolvable:$true] %s2219_s2 }
0x16e9   :  { %2599 = vmatprep.subr.bf16.mxu1 %v2747_v37  ;;  %s2716_s4 = scalar_lea.vmem %s2220_s2, 32  ;;  %p2721_p1 = scmp.lt.s32.totalorder %s2220_s2, %s2220_s2 }
0x16ea   :  { %2595 = vmatpush3.bf16.msra.mxu0 %v2594_v51  ;;  %p2717_p0 = scmp.ne.s32.totalorder %s2220_s2, %s2716_s4  ;;  %p2722_p2 = scmp.lt.s32.totalorder %s2716_s4, %s2716_s4 }
0x16eb   :  { %2498 = vmatmul.mubr.msk.f32.vlgmr.msra.gmra.mrb[16].mxu1 %vm160_vm2, %v1981_v19  ;;  %2596 = vmatprep.subr.bf16.mxu0 %v2747_v37 }
0x16ec   :  { %2601 = vmatpush3.bf16.msra.mxu1 %v2600_v38  ;;  %2515 = vmatprep.mubr.msk.f32.mxu1 %vm2748_vm5, %v2749_v32  ;;  %p2723_p3 = por %p2722_p2, %p2721_p1 }
0x16ee   :  { %2598 = vmatpush3.bf16.msra.mxu0 %v2597_v54  ;;  %p2724_p4 = pnand %p2723_p3, %p2717_p0 }
0x17ba   :  { %v1977_v55 = vpop.f32.mrb[14].mxu1 }
0x17bb   :  { %v2494_v56 = vpop.f32.mrb[15].mxu1  ;;  %2516 = vmatmul.mubr.msk.f32.vlgmr.msra.gmra.mrb[18].mxu1 %vm64_vm1, %v1977_v55 }
0x17be   :  { %v2055_v58 = vpop.f32.mrb[16].mxu1 }
0x17bf   :  { %v2056_v22 = vadd.f32 %v2055_v58, %v1985_v21  ;;  %v2499_v59 = vpop.f32.mrb[17].mxu1 }
0x17c1   :  { %v2059_v60 = vmax.f32 %v2056_v22, 0.0 }
0x17c3   :  { %2509 = vmatmul.mubr.msk.f32.vlgmr.msra.gmra.mrb[18].mxu0 %vm867_vm4, %v2059_v60 }
0x188e   :  { %v2202_v61 = vpop.f32.mrb[18].mxu1 }
0x188f   :  { %v2517_v62 = vpop.f32.mrb[19].mxu1 }
0x1896   :  { %v2129_v43 = vpop.f32.mrb[18].mxu0 }
0x1897   :  { %v2203_v2 = vadd.f32 %v2202_v61, %v2129_v43  ;;  %v2510_v3 = vpop.f32.mrb[19].mxu0 }
0x1899   :  { %v2210_v4 = vadd.f32 %v2209_v63, %v2203_v2 }
0x189b   :  { %2212 = vst.msk [vmem:[#allocation2] sm:$0x3] %vm2211_vm6, %v2210_v4 }
0x189c   :  { %2727 = shalt.err (!%p2724_p4)
}
0x189d   :  { %s2728_s7 = scalar_lea.hbm %s3139_s5, 32 }
0x189e   :  { %p2729_p5 = scmp.ne.s32.totalorder %s3139_s5, %s2728_s7  ;;  %p2732_p6 = scmp.lt.u32.totalorder %s2728_s7, %s3139_s5 }
0x18a0   :  { %p2734_p7 = pnand %p2732_p6, %p2729_p5 }
0x18a2   :  { %2737 = shalt.err (!%p2734_p7)
}
0x18a3   :  { %2222 = dma.vmem_to_hbm [thread:$0]  %s2220_s2, 32, %s3139_s5, [#allocation3]  }
0x18a4   :  { %2738 = dma.done.wait [#allocation3], 32  }
0x18a5   :  { %2739 = vsyncadd [#allocation3], 4294967264 }
0x18a6   :  { %2226 = vsyncpa [#allocation3], 1 }

</bundles_post_ra>
